<compile_context>
chip_gen: v7x
topology: tpu7x:2x2x1
jax: 0.10.0
libtpu: 0.0.40
codegen_flags: <defaults>
</compile_context>

<pallas_src>
import functools
import math

import jax
import jax.numpy as jnp
from jax.experimental import pallas as pl
from jax.experimental.pallas import tpu as pltpu


# ---------------------------------------------------------------------------
# Pass 1: fused QKV projection  (B, S, H) @ (H, 3H) -> bf16 Q, K, V  (B, S, H)
# ---------------------------------------------------------------------------
def qkv_projection_kernel(x_ref, w_ref, b_ref, q_ref, k_ref, v_ref):
    H = x_ref.shape[-1]
    # bf16 MXU operands, f32 accumulation; bias added in f32. The 1/sqrt(d)
    # scale for q is already folded into w/b at param-prep time.
    qkv = jnp.dot(x_ref[0], w_ref[...],
                  preferred_element_type=jnp.float32) + b_ref[...]
    # Static, lane-aligned column slices -> three lane-dense bf16 outputs.
    q_ref[0] = qkv[:, :H].astype(q_ref.dtype)
    k_ref[0] = qkv[:, H:2 * H].astype(k_ref.dtype)
    v_ref[0] = qkv[:, 2 * H:].astype(v_ref.dtype)


def _qkv_projection(x_bf, wqkv, bqkv, seq_tile, vmem_limit, single_buffer_weights):
    B, S, H = x_bf.shape
    n_s = S // seq_tile
    # TODO(synk): for very large H the (H, 3H) weight should itself be tiled over
    # its output dimension; at typical transformer widths it fits VMEM as-is.

    def const_spec(shape):
        nd = len(shape)
        index_map = lambda b, si, _nd=nd: (0,) * _nd
        if single_buffer_weights:
            # Constant blocks: single-buffer them (double-buffering is pure VMEM waste).
            return pl.BlockSpec(shape, index_map, pipeline_mode=pl.Buffered(1))
        return pl.BlockSpec(shape, index_map)

    out_sds = jax.ShapeDtypeStruct((B, S, H), jnp.bfloat16)
    seq_spec = pl.BlockSpec((1, seq_tile, H), lambda b, si: (b, si, 0))
    return pl.pallas_call(
        qkv_projection_kernel,
        out_shape=(out_sds, out_sds, out_sds),
        grid_spec=pltpu.PrefetchScalarGridSpec(
            num_scalar_prefetch=0,
            grid=(B, n_s),
            in_specs=[seq_spec, const_spec(wqkv.shape), const_spec(bqkv.shape)],
            out_specs=(seq_spec, seq_spec, seq_spec),
        ),
        compiler_params=pltpu.CompilerParams(
            dimension_semantics=("parallel", "parallel"),
            vmem_limit_bytes=vmem_limit,
        ),
    )(x_bf, wqkv, bqkv)


# ---------------------------------------------------------------------------
# Pass 2: flash-style multi-head attention over KV tiles
# ---------------------------------------------------------------------------
def attention_kernel(q_ref, k_ref, v_ref, o_ref, m_sc, l_sc, acc_sc, *, num_heads):
    ki = pl.program_id(2)

    @pl.when(ki == 0)
    def _():
        m_sc[...] = jnp.full_like(m_sc, -jnp.inf)
        l_sc[...] = jnp.zeros_like(l_sc)
        acc_sc[...] = jnp.zeros_like(acc_sc)

    q = q_ref[0]                                  # (tq,  H) bf16, scale folded in
    k = k_ref[0]                                  # (tkv, H) bf16
    v = v_ref[0]                                  # (tkv, H) bf16
    tq, H = q.shape
    tkv = k.shape[0]
    d = H // num_heads

    # Batched-head layout (nh, rows, d): one reshape + head-major transpose each.
    qh = jnp.transpose(q.reshape(tq, num_heads, d), (1, 0, 2))
    kh = jnp.transpose(k.reshape(tkv, num_heads, d), (1, 0, 2))
    vh = jnp.transpose(v.reshape(tkv, num_heads, d), (1, 0, 2))

    # (nh, tq, tkv) attention scores in f32 (1/sqrt(d) already folded into q).
    s = jnp.einsum("hqd,hkd->hqk", qh, kh, preferred_element_type=jnp.float32)

    # Online softmax, f32 throughout (v5e has no bf16 VPU/EUP).
    m_new = jnp.maximum(m_sc[...], jnp.max(s, axis=-1, keepdims=True))
    alpha = jnp.exp(m_sc[...] - m_new)
    p = jnp.exp(s - m_new)
    l_sc[...] = alpha * l_sc[...] + jnp.sum(p, axis=-1, keepdims=True)
    acc_sc[...] = alpha * acc_sc[...] + jnp.einsum(
        "hqk,hkd->hqd", p.astype(jnp.bfloat16), vh,
        preferred_element_type=jnp.float32)
    m_sc[...] = m_new

    @pl.when(ki == pl.num_programs(2) - 1)
    def _():
        # attention-probs dropout is identity in eval / inference mode.
        ctx = acc_sc[...] * pl.reciprocal(l_sc[...], approx=True)   # (nh, tq, d)
        # Merge heads with direct lane-slice stores (no transpose/reshape copy).
        for h in range(num_heads):
            o_ref[0, :, h * d:(h + 1) * d] = ctx[h].astype(o_ref.dtype)


def _attention(q, k, v, num_heads, q_tile, kv_tile, vmem_limit, out_dtype):
    B, S, H = q.shape
    d = H // num_heads
    n_q = S // q_tile
    n_kv = S // kv_tile

    return pl.pallas_call(
        functools.partial(attention_kernel, num_heads=num_heads),
        out_shape=jax.ShapeDtypeStruct((B, S, H), out_dtype),
        grid_spec=pltpu.PrefetchScalarGridSpec(
            num_scalar_prefetch=0,
            grid=(B, n_q, n_kv),
            in_specs=[
                pl.BlockSpec((1, q_tile, H), lambda b, qi, ki: (b, qi, 0)),
                pl.BlockSpec((1, kv_tile, H), lambda b, qi, ki: (b, ki, 0)),
                pl.BlockSpec((1, kv_tile, H), lambda b, qi, ki: (b, ki, 0)),
            ],
            out_specs=pl.BlockSpec((1, q_tile, H), lambda b, qi, ki: (b, qi, 0)),
            scratch_shapes=[
                pltpu.VMEM((num_heads, q_tile, 1), jnp.float32),   # m
                pltpu.VMEM((num_heads, q_tile, 1), jnp.float32),   # l
                pltpu.VMEM((num_heads, q_tile, d), jnp.float32),   # acc
            ],
        ),
        compiler_params=pltpu.CompilerParams(
            dimension_semantics=("parallel", "parallel", "arbitrary"),
            vmem_limit_bytes=vmem_limit,
        ),
    )(q, k, v)


# ---------------------------------------------------------------------------
# Wrapper / param prep
# ---------------------------------------------------------------------------
def prepare_params(params, num_heads):
    """One-time param prep: fuse QKV weights into (H, 3H), fold 1/sqrt(d) into
    the query column block, cast weights to bf16 (biases stay f32)."""
    H = params["wq"].shape[0]
    d = H // num_heads
    scale = 1.0 / math.sqrt(d)
    wqkv = jnp.concatenate(
        [params["wq"] * scale, params["wk"], params["wv"]], axis=1
    ).astype(jnp.bfloat16)
    bqkv = jnp.concatenate(
        [params["bq"] * scale, params["bk"], params["bv"]], axis=1
    ).astype(jnp.float32)
    return wqkv, bqkv


def _pick_q_tile(S):
    # Never below 128 for the matmul M dimension; whole S when S is small.
    # (On v5e, q_tile=128 matches the 4x128^2 MXU -- pass q_tile=128 explicitly.)
    if S <= 256:
        return S
    for t in (256, 128):
        if S % t == 0:
            return t
    return S


def _pick_kv_tile(S):
    if S <= 512:
        return S
    for t in (512, 256, 128):
        if S % t == 0:
            return t
    return S


def _vmem_limit_bytes():
    # ~3/4 of the chip's VMEM (48 MiB on v7x's 64 MiB, 96 MiB on v5e/v6e 128 MiB),
    # leaving headroom for compiler-internal scratch.
    try:
        cap = pltpu.get_tpu_info().vmem_capacity_bytes
    except Exception:
        cap = 128 * 1024 * 1024
    return int(min(cap * 3 // 4, 100 * 1024 * 1024))


def self_attention(hidden_states, wqkv, bqkv, num_heads,
                   q_tile=None, kv_tile=None, seq_tile=None):
    """Eval-mode forward of SelfAttention (no attention_mask / structure_matrix)."""
    B, S, H = hidden_states.shape
    assert H % num_heads == 0, "hidden_size must be divisible by num_heads"
    assert wqkv.shape == (H, 3 * H) and bqkv.shape == (1, 3 * H)

    q_tile = _pick_q_tile(S) if q_tile is None else q_tile
    kv_tile = _pick_kv_tile(S) if kv_tile is None else kv_tile
    seq_tile = _pick_q_tile(S) if seq_tile is None else seq_tile
    assert S % q_tile == 0 and S % kv_tile == 0 and S % seq_tile == 0
    # TODO(synk): non-multiple-of-tile S would need masking of padded key rows.

    vmem_limit = _vmem_limit_bytes()

    # Cast activations to bf16 once; kernels only ever consume bf16 operands.
    x_bf = hidden_states.astype(jnp.bfloat16)

    # Pass 1: fused QKV projection, computed exactly once per token.
    try:
        q, k, v = _qkv_projection(x_bf, wqkv, bqkv, seq_tile, vmem_limit, True)
    except Exception:
        # pl.Buffered(1) unsupported on this jax version -> default buffering.
        q, k, v = _qkv_projection(x_bf, wqkv, bqkv, seq_tile, vmem_limit, False)

    # Pass 2: flash-style attention over KV tiles.
    return _attention(q, k, v, num_heads, q_tile, kv_tile, vmem_limit,
                      hidden_states.dtype)


# ---------------------------------------------------------------------------
# Reference + demo
# ---------------------------------------------------------------------------
def init_params(key, hidden_size):
    H = hidden_size
    ks = jax.random.split(key, 3)

    def lin(k, fan_in, fan_out):
        bound = 1.0 / math.sqrt(fan_in)
        kw, kb = jax.random.split(k)
        w = jax.random.uniform(kw, (fan_in, fan_out), jnp.float32, -bound, bound)
        b = jax.random.uniform(kb, (1, fan_out), jnp.float32, -bound, bound)
        return w, b

    wq, bq = lin(ks[0], H, H)
    wk, bk = lin(ks[1], H, H)
    wv, bv = lin(ks[2], H, H)
    return dict(wq=wq, bq=bq, wk=wk, bk=bk, wv=wv, bv=bv)


def reference_jax(x, p, num_heads):
    """Pure-JAX reference mirroring the kernel numerics (bf16 matmul inputs,
    f32 accumulation) and the PyTorch eval-mode forward."""
    B, S, H = x.shape
    d = H // num_heads
    scale = 1.0 / math.sqrt(d)

    def lin(v, w, b):
        return jnp.dot(v.astype(jnp.bfloat16), w.astype(jnp.bfloat16),
                       preferred_element_type=jnp.float32) + b

    def heads(t):  # (B, S, H) -> (B, nh, S, d)
        return t.reshape(B, S, num_heads, d).transpose(0, 2, 1, 3)

    q = heads(lin(x, p["wq"], p["bq"]) * scale).astype(jnp.bfloat16)
    k = heads(lin(x, p["wk"], p["bk"])).astype(jnp.bfloat16)
    v = heads(lin(x, p["wv"], p["bv"])).astype(jnp.bfloat16)

    s = jnp.einsum("bhqd,bhkd->bhqk", q, k, preferred_element_type=jnp.float32)
    probs = jax.nn.softmax(s, axis=-1)
    ctx = jnp.einsum("bhqk,bhkd->bhqd", probs.astype(jnp.bfloat16), v,
                     preferred_element_type=jnp.float32)
    return ctx.transpose(0, 2, 1, 3).reshape(B, S, H)


if __name__ == "__main__":
    # Small, lane-aligned demo shapes (head dim d = H / num_heads = 128).
    B, S, H = 2, 32, 256
    NUM_HEADS = 2

    key = jax.random.PRNGKey(0)
    kx, kp = jax.random.split(key)
    x = jax.random.normal(kx, (B, S, H), jnp.float32)
    params = init_params(kp, H)
    wqkv, bqkv = prepare_params(params, NUM_HEADS)

    # Tiles overridden only to exercise multi-tile grids (including the
    # online-softmax KV axis) at toy sizes; defaults pick >=128 / whole-S tiles.
    out = self_attention(x, wqkv, bqkv, NUM_HEADS,
                         q_tile=16, kv_tile=16, seq_tile=16)
    out = jax.block_until_ready(out)

    ref = reference_jax(x, params, NUM_HEADS)
    assert out.shape == (B, S, H)
    max_err = float(jnp.abs(out - ref).max())
    assert jnp.allclose(out, ref, atol=2e-2, rtol=2e-2), max_err

    print("KERNEL_OK")
</pallas_src>

<mosaic_0001>
module attributes {stable_mosaic.version = 11 : i64} {
  func.func @qkv_projection_kernel(%arg0: i32, %arg1: i32, %arg2: memref<1x16x256xbf16, #tpu.memory_space<vmem>>, %arg3: memref<256x768xbf16, #tpu.memory_space<vmem>>, %arg4: memref<1x768xf32, #tpu.memory_space<vmem>>, %arg5: memref<1x16x256xbf16, #tpu.memory_space<vmem>>, %arg6: memref<1x16x256xbf16, #tpu.memory_space<vmem>>, %arg7: memref<1x16x256xbf16, #tpu.memory_space<vmem>>) attributes {dimension_semantics = [#tpu.dimension_semantics<parallel>, #tpu.dimension_semantics<parallel>], iteration_bounds = array<i64: 2, 2>, scalar_prefetch = 0 : i64, scratch_operands = 0 : i64, tpu.core_type = #tpu.core_type<tc>, window_params = [{transform_indices = @transform_0, window_bounds = array<i64: 1, 16, 256>}, {pipeline_mode = #tpu.pipeline_mode<synchronous>, transform_indices = @transform_1, window_bounds = array<i64: 256, 768>}, {pipeline_mode = #tpu.pipeline_mode<synchronous>, transform_indices = @transform_2, window_bounds = array<i64: 1, 768>}, {transform_indices = @transform_3, window_bounds = array<i64: 1, 16, 256>}, {transform_indices = @transform_4, window_bounds = array<i64: 1, 16, 256>}, {transform_indices = @transform_5, window_bounds = array<i64: 1, 16, 256>}]} {
    %c0 = arith.constant 0 : index
    %c0_0 = arith.constant 0 : index
    %c0_1 = arith.constant 0 : index
    %0 = vector.load %arg2[%c0, %c0_0, %c0_1] : memref<1x16x256xbf16, #tpu.memory_space<vmem>>, vector<1x16x256xbf16>
    %1 = vector.shape_cast %0 : vector<1x16x256xbf16> to vector<16x256xbf16>
    %c0_2 = arith.constant 0 : index
    %c0_3 = arith.constant 0 : index
    %2 = vector.load %arg3[%c0_2, %c0_3] : memref<256x768xbf16, #tpu.memory_space<vmem>>, vector<256x768xbf16>
    %cst = arith.constant dense<0.000000e+00> : vector<16x768xf32>
    %3 = tpu.matmul %1, %2, %cst {dimension_numbers = #tpu.dot_dimension_numbers<[1], [0], [0], [1], [0, 0, 1, 1], [], []>} : vector<16x256xbf16>, vector<256x768xbf16>, vector<16x768xf32> -> vector<16x768xf32>
    %c0_4 = arith.constant 0 : index
    %c0_5 = arith.constant 0 : index
    %4 = vector.load %arg4[%c0_4, %c0_5] : memref<1x768xf32, #tpu.memory_space<vmem>>, vector<1x768xf32>
    %5 = vector.broadcast %4 : vector<1x768xf32> to vector<16x768xf32>
    %6 = arith.addf %3, %5 : vector<16x768xf32>
    %7 = vector.extract_strided_slice %6 {offsets = [0, 0], sizes = [16, 256], strides = [1, 1]} : vector<16x768xf32> to vector<16x256xf32>
    %8 = arith.truncf %7 : vector<16x256xf32> to vector<16x256xbf16>
    %c0_6 = arith.constant 0 : index
    %c0_7 = arith.constant 0 : index
    %c0_8 = arith.constant 0 : index
    %9 = vector.load %arg5[%c0_6, %c0_7, %c0_8] : memref<1x16x256xbf16, #tpu.memory_space<vmem>>, vector<1x16x256xbf16>
    %10 = vector.shape_cast %9 : vector<1x16x256xbf16> to vector<16x256xbf16>
    %11 = vector.shape_cast %8 : vector<16x256xbf16> to vector<1x16x256xbf16>
    tpu.vector_store %arg5[%c0_6, %c0_7, %c0_8], %11 {strides = array<i32>} : memref<1x16x256xbf16, #tpu.memory_space<vmem>>, vector<1x16x256xbf16>,
    %12 = vector.extract_strided_slice %6 {offsets = [0, 256], sizes = [16, 256], strides = [1, 1]} : vector<16x768xf32> to vector<16x256xf32>
    %13 = arith.truncf %12 : vector<16x256xf32> to vector<16x256xbf16>
    %c0_9 = arith.constant 0 : index
    %c0_10 = arith.constant 0 : index
    %c0_11 = arith.constant 0 : index
    %14 = vector.load %arg6[%c0_9, %c0_10, %c0_11] : memref<1x16x256xbf16, #tpu.memory_space<vmem>>, vector<1x16x256xbf16>
    %15 = vector.shape_cast %14 : vector<1x16x256xbf16> to vector<16x256xbf16>
    %16 = vector.shape_cast %13 : vector<16x256xbf16> to vector<1x16x256xbf16>
    tpu.vector_store %arg6[%c0_9, %c0_10, %c0_11], %16 {strides = array<i32>} : memref<1x16x256xbf16, #tpu.memory_space<vmem>>, vector<1x16x256xbf16>,
    %17 = vector.extract_strided_slice %6 {offsets = [0, 512], sizes = [16, 256], strides = [1, 1]} : vector<16x768xf32> to vector<16x256xf32>
    %18 = arith.truncf %17 : vector<16x256xf32> to vector<16x256xbf16>
    %c0_12 = arith.constant 0 : index
    %c0_13 = arith.constant 0 : index
    %c0_14 = arith.constant 0 : index
    %19 = vector.load %arg7[%c0_12, %c0_13, %c0_14] : memref<1x16x256xbf16, #tpu.memory_space<vmem>>, vector<1x16x256xbf16>
    %20 = vector.shape_cast %19 : vector<1x16x256xbf16> to vector<16x256xbf16>
    %21 = vector.shape_cast %18 : vector<16x256xbf16> to vector<1x16x256xbf16>
    tpu.vector_store %arg7[%c0_12, %c0_13, %c0_14], %21 {strides = array<i32>} : memref<1x16x256xbf16, #tpu.memory_space<vmem>>, vector<1x16x256xbf16>,
    return
  }
  func.func @transform_0(%arg0: i32, %arg1: i32) -> (i32, i32, i32) {
    %c0_i32 = arith.constant 0 : i32
    %c0_i32_0 = arith.constant 0 : i32
    return %arg0, %arg1, %c0_i32 : i32, i32, i32
  }
  func.func @transform_1(%arg0: i32, %arg1: i32) -> (i32, i32) {
    %c0_i32 = arith.constant 0 : i32
    %c0_i32_0 = arith.constant 0 : i32
    %c0_i32_1 = arith.constant 0 : i32
    return %c0_i32, %c0_i32_0 : i32, i32
  }
  func.func @transform_2(%arg0: i32, %arg1: i32) -> (i32, i32) {
    %c0_i32 = arith.constant 0 : i32
    %c0_i32_0 = arith.constant 0 : i32
    %c0_i32_1 = arith.constant 0 : i32
    return %c0_i32, %c0_i32_0 : i32, i32
  }
  func.func @transform_3(%arg0: i32, %arg1: i32) -> (i32, i32, i32) {
    %c0_i32 = arith.constant 0 : i32
    %c0_i32_0 = arith.constant 0 : i32
    return %arg0, %arg1, %c0_i32 : i32, i32, i32
  }
  func.func @transform_4(%arg0: i32, %arg1: i32) -> (i32, i32, i32) {
    %c0_i32 = arith.constant 0 : i32
    %c0_i32_0 = arith.constant 0 : i32
    return %arg0, %arg1, %c0_i32 : i32, i32, i32
  }
  func.func @transform_5(%arg0: i32, %arg1: i32) -> (i32, i32, i32) {
    %c0_i32 = arith.constant 0 : i32
    %c0_i32_0 = arith.constant 0 : i32
    return %arg0, %arg1, %c0_i32 : i32, i32, i32
  }
}

module attributes {stable_mosaic.version = 11 : i64} {
  func.func @qkv_projection_kernel(%arg0: i32, %arg1: i32, %arg2: memref<1x16x256xbf16, #tpu.memory_space<vmem>>, %arg3: memref<256x768xbf16, #tpu.memory_space<vmem>>, %arg4: memref<1x768xf32, #tpu.memory_space<vmem>>, %arg5: memref<1x16x256xbf16, #tpu.memory_space<vmem>>, %arg6: memref<1x16x256xbf16, #tpu.memory_space<vmem>>, %arg7: memref<1x16x256xbf16, #tpu.memory_space<vmem>>) attributes {dimension_semantics = [#tpu.dimension_semantics<parallel>, #tpu.dimension_semantics<parallel>], iteration_bounds = array<i64: 2, 2>, scalar_prefetch = 0 : i64, scratch_operands = 0 : i64, tpu.core_type = #tpu.core_type<tc>, window_params = [{transform_indices = @transform_0, window_bounds = array<i64: 1, 16, 256>}, {pipeline_mode = #tpu.pipeline_mode<synchronous>, transform_indices = @transform_1, window_bounds = array<i64: 256, 768>}, {pipeline_mode = #tpu.pipeline_mode<synchronous>, transform_indices = @transform_2, window_bounds = array<i64: 1, 768>}, {transform_indices = @transform_3, window_bounds = array<i64: 1, 16, 256>}, {transform_indices = @transform_4, window_bounds = array<i64: 1, 16, 256>}, {transform_indices = @transform_5, window_bounds = array<i64: 1, 16, 256>}]} {
    %c0 = arith.constant 0 : index
    %c0_0 = arith.constant 0 : index
    %c0_1 = arith.constant 0 : index
    %0 = vector.load %arg2[%c0, %c0_0, %c0_1] : memref<1x16x256xbf16, #tpu.memory_space<vmem>>, vector<1x16x256xbf16>
    %1 = vector.shape_cast %0 : vector<1x16x256xbf16> to vector<16x256xbf16>
    %c0_2 = arith.constant 0 : index
    %c0_3 = arith.constant 0 : index
    %2 = vector.load %arg3[%c0_2, %c0_3] : memref<256x768xbf16, #tpu.memory_space<vmem>>, vector<256x768xbf16>
    %cst = arith.constant dense<0.000000e+00> : vector<16x768xf32>
    %3 = tpu.matmul %1, %2, %cst {dimension_numbers = #tpu.dot_dimension_numbers<[1], [0], [0], [1], [0, 0, 1, 1], [], []>} : vector<16x256xbf16>, vector<256x768xbf16>, vector<16x768xf32> -> vector<16x768xf32>
    %c0_4 = arith.constant 0 : index
    %c0_5 = arith.constant 0 : index
    %4 = vector.load %arg4[%c0_4, %c0_5] : memref<1x768xf32, #tpu.memory_space<vmem>>, vector<1x768xf32>
    %5 = vector.broadcast %4 : vector<1x768xf32> to vector<16x768xf32>
    %6 = arith.addf %3, %5 : vector<16x768xf32>
    %7 = vector.extract_strided_slice %6 {offsets = [0, 0], sizes = [16, 256], strides = [1, 1]} : vector<16x768xf32> to vector<16x256xf32>
    %8 = arith.truncf %7 : vector<16x256xf32> to vector<16x256xbf16>
    %c0_6 = arith.constant 0 : index
    %c0_7 = arith.constant 0 : index
    %c0_8 = arith.constant 0 : index
    %9 = vector.load %arg5[%c0_6, %c0_7, %c0_8] : memref<1x16x256xbf16, #tpu.memory_space<vmem>>, vector<1x16x256xbf16>
    %10 = vector.shape_cast %9 : vector<1x16x256xbf16> to vector<16x256xbf16>
    %11 = vector.shape_cast %8 : vector<16x256xbf16> to vector<1x16x256xbf16>
    tpu.vector_store %arg5[%c0_6, %c0_7, %c0_8], %11 {strides = array<i32>} : memref<1x16x256xbf16, #tpu.memory_space<vmem>>, vector<1x16x256xbf16>,
    %12 = vector.extract_strided_slice %6 {offsets = [0, 256], sizes = [16, 256], strides = [1, 1]} : vector<16x768xf32> to vector<16x256xf32>
    %13 = arith.truncf %12 : vector<16x256xf32> to vector<16x256xbf16>
    %c0_9 = arith.constant 0 : index
    %c0_10 = arith.constant 0 : index
    %c0_11 = arith.constant 0 : index
    %14 = vector.load %arg6[%c0_9, %c0_10, %c0_11] : memref<1x16x256xbf16, #tpu.memory_space<vmem>>, vector<1x16x256xbf16>
    %15 = vector.shape_cast %14 : vector<1x16x256xbf16> to vector<16x256xbf16>
    %16 = vector.shape_cast %13 : vector<16x256xbf16> to vector<1x16x256xbf16>
    tpu.vector_store %arg6[%c0_9, %c0_10, %c0_11], %16 {strides = array<i32>} : memref<1x16x256xbf16, #tpu.memory_space<vmem>>, vector<1x16x256xbf16>,
    %17 = vector.extract_strided_slice %6 {offsets = [0, 512], sizes = [16, 256], strides = [1, 1]} : vector<16x768xf32> to vector<16x256xf32>
    %18 = arith.truncf %17 : vector<16x256xf32> to vector<16x256xbf16>
    %c0_12 = arith.constant 0 : index
    %c0_13 = arith.constant 0 : index
    %c0_14 = arith.constant 0 : index
    %19 = vector.load %arg7[%c0_12, %c0_13, %c0_14] : memref<1x16x256xbf16, #tpu.memory_space<vmem>>, vector<1x16x256xbf16>
    %20 = vector.shape_cast %19 : vector<1x16x256xbf16> to vector<16x256xbf16>
    %21 = vector.shape_cast %18 : vector<16x256xbf16> to vector<1x16x256xbf16>
    tpu.vector_store %arg7[%c0_12, %c0_13, %c0_14], %21 {strides = array<i32>} : memref<1x16x256xbf16, #tpu.memory_space<vmem>>, vector<1x16x256xbf16>,
    return
  }
  func.func @transform_0(%arg0: i32, %arg1: i32) -> (i32, i32, i32) {
    %c0_i32 = arith.constant 0 : i32
    %c0_i32_0 = arith.constant 0 : i32
    return %arg0, %arg1, %c0_i32 : i32, i32, i32
  }
  func.func @transform_1(%arg0: i32, %arg1: i32) -> (i32, i32) {
    %c0_i32 = arith.constant 0 : i32
    %c0_i32_0 = arith.constant 0 : i32
    %c0_i32_1 = arith.constant 0 : i32
    return %c0_i32, %c0_i32_0 : i32, i32
  }
  func.func @transform_2(%arg0: i32, %arg1: i32) -> (i32, i32) {
    %c0_i32 = arith.constant 0 : i32
    %c0_i32_0 = arith.constant 0 : i32
    %c0_i32_1 = arith.constant 0 : i32
    return %c0_i32, %c0_i32_0 : i32, i32
  }
  func.func @transform_3(%arg0: i32, %arg1: i32) -> (i32, i32, i32) {
    %c0_i32 = arith.constant 0 : i32
    %c0_i32_0 = arith.constant 0 : i32
    return %arg0, %arg1, %c0_i32 : i32, i32, i32
  }
  func.func @transform_4(%arg0: i32, %arg1: i32) -> (i32, i32, i32) {
    %c0_i32 = arith.constant 0 : i32
    %c0_i32_0 = arith.constant 0 : i32
    return %arg0, %arg1, %c0_i32 : i32, i32, i32
  }
  func.func @transform_5(%arg0: i32, %arg1: i32) -> (i32, i32, i32) {
    %c0_i32 = arith.constant 0 : i32
    %c0_i32_0 = arith.constant 0 : i32
    return %arg0, %arg1, %c0_i32 : i32, i32, i32
  }
}

</mosaic_0001>

<bundles_post_ra>
// kernel: tpu_custom_call.1
= control target key start
LH: loop header
LB: loop body
LE: loop exit
PB: predicated region body
PF: predicated region fallthrough
CT: control target
= control target key end

     0   :  { %s2437_s0 = inlined_call_operand.hbm [shape: bf16[2,32,256], index: 0, kind: input, shape index: {}]   ;;  %s2438_s1 = inlined_call_operand.hbm [shape: bf16[256,768], index: 1, kind: input, shape index: {}]   ;;  %s2439_s2 = inlined_call_operand.hbm [shape: f32[1,768], index: 2, kind: input, shape index: {}]   ;;  %s2440_s3 = inlined_call_operand.hbm [shape: bf16[2,32,256], index: 3, kind: output, shape index: {0}]   ;;  %s2441_s4 = inlined_call_operand.hbm [shape: bf16[2,32,256], index: 4, kind: output, shape index: {1}]   ;;  %s2442_s5 = inlined_call_operand.hbm [shape: bf16[2,32,256], index: 5, kind: output, shape index: {2}]  }
   0x1   :  { %2452 = sst [smem:[#allocation19_spill]] %s2438_s1 }
   0x2   :  { %2453 = sst [smem:[#allocation20_spill]] %s2439_s2 }
   0x3   :  { %2454 = sst [smem:[#allocation21_spill]] %s2441_s4 }
   0x4   :  { %2455 = sst [smem:[#allocation22_spill]] %s2442_s5 }
   0x5   :  { %11 = vsyncpa [#allocation3], 0 }
   0x6   :  { %13 = vsyncpa [#allocation3 + $0x1], 0 }
   0x7   :  { %14 = vsyncpa [#allocation6], 0 }
   0x8   :  { %15 = vsyncpa [#allocation4], 0 }
   0x9   :  { %17 = vsyncpa [#allocation4 + $0x1], 0 }
   0xa   :  { %18 = vsyncpa [#allocation10], 0 }
   0xb   :  { %20 = vsyncpa [#allocation10 + $0x1], 0  ;;  %s2050_s18 = smov 0   ;;  %s2052_s19 = smov 0  }
   0xc   :  { %s2054_s20 = smov 0   ;;  %s2056_s21 = smov 0  }
   0xd   :  { %s2058_s22 = smov 0   ;;  %s2060_s23 = smov 0  }
   0xe   :  { %s2062_s24 = smov 0   ;;  %s2064_s25 = smov 0  }
   0xf LB: > { %2456 = sst [smem:[#allocation16_spill]] %s1978_s18  ;;  %s2091_s26 = sadd.s32 4294967295, %s2006_s25   ;;  %s2006_s25 = sphi %s2064_s25, %s26_s25   ;;  %s2002_s24 = sphi %s2062_s24, %s2486_s24   ;;  %s1998_s23 = sphi %s2060_s23, %s2485_s23   ;;  %s1994_s22 = sphi %s2058_s22, %s2484_s22   ;;  %s1990_s21 = sphi %s2056_s21, %s2483_s21   ;;  %s1986_s20 = sphi %s2054_s20, %s2482_s20   ;;  %s1982_s19 = sphi %s2052_s19, %s2481_s19   ;;  %s1978_s18 = sphi %s2050_s18, %s2480_s18  }
  0x10   : > { %s2446_s27 = sadd.s32 4294967294, %s2006_s25   ;;  %p60_p0 = scmp.ne.s32.totalorder %s1982_s19, %s1978_s18 }
  0x11   : > { %p2443_p1 = scmp.eq.s32.totalorder %s2091_s26, 0  ;;  %p134_p3 = scmp.eq.s32.totalorder %s2446_s27, 3 }
  0x12   : > { %p1349_p5 = scmp.ge.s32.totalorder %s2006_s25, 1  ;;  %p197_p7 = scmp.lt.s32.totalorder %s2006_s25, 5 }
  0x13   : > { %p2102_p4 = por %p2443_p1, %p60_p0  ;;  %p2107_p6 = por %p134_p3, %p60_p0 }
  0x14   : > { %p2112_p8 = pnand %p1349_p5, %p197_p7  ;;  %s2008_s6 = smov [#allocation5]  }
  0x15   : > { %s2457_s28 = scalar_select %p2102_p4, 1, 0 }
  0x16   : > { %s2458_s29 = scalar_select %p2107_p6, 1, 0 }
  0x17   : > { %s2460_s30 = scalar_select %p2112_p8, 1, 0 }
  0x18   : > { %2459 = sst [smem:[#allocation17_spill]] %s2458_s29  ;;  %s209_s7 = sshll.u32 %s2008_s6, 4  ;;  %s210_s7 = int_to_ptr.vmem [resolvable:$true] %s209_s7 }
  0x19   : > { %p1512_p9 = pneg %p2112_p8  ;;  %s2009_s9 = smov [#allocation7]  }
  0x1a   : > { %s223_s10 = sshll.u32 %s2009_s9, 4  ;;  %s2462_s1 = sld [smem:[#allocation19_spill]]  ;;  %s2124_s10 = int_to_ptr.vmem [resolvable:$true] %s223_s10 }
  0x1b   : > { %p2120_p10 = pnand %p1512_p9, %p2443_p1 }
  0x1d   : > { %p1760_p12 = pneg %p2120_p10 }
  0x20   : > { %s1758_s13 = scalar_lea.hbm %s2462_s1, 12288 }
  0x21   : > { %p1759_p11 = scmp.ne.s32.totalorder %s2462_s1, %s1758_s13  ;;  %p1765_p3 = scmp.lt.u32.totalorder %s1758_s13, %s2462_s1 }
  0x23   : > { %p1761_p13 = pnand %p1760_p12, %p1759_p11 }
  0x25   : > { %p1762_p0 = pneg %p1761_p13 }
  0x27   : > { %p1767_p5 = pnand %p1765_p3, %p1762_p0 }
  0x29   : > { %1770 = shalt.err (!%p1767_p5)
}
  0x2a   : > { %s1771_s6 = scalar_lea.vmem %s210_s7, 12288  ;;  %p1779_p2 = scmp.lt.s32.totalorder %s210_s7, %s210_s7 }
  0x2b   : > { %p1772_p7 = scmp.ne.s32.totalorder %s210_s7, %s1771_s6  ;;  %p1780_p6 = scmp.lt.s32.totalorder %s1771_s6, %s1771_s6 }
  0x2d   : > { %p1774_p9 = pnand %p1772_p7, %p1760_p12  ;;  %p1781_p4 = por %p1780_p6, %p1779_p2 }
  0x2f   : > { %p1775_p1 = pneg %p1774_p9 }
  0x31   : > { %p1782_p8 = pnand %p1781_p4, %p1775_p1 }
  0x33   : > { %1785 = shalt.err (!%p1782_p8)
}
  0x34   : > { %s2010_s9 = smov 384   ;;  %s2011_s11 = smov 24  }
  0x35   : > { %1515 = dma.hbm_to_vmem [thread:$0]  (!%p2120_p10), %s2462_s1, 12288, %s210_s7, [#allocation6], %s2010_s9, %s2010_s9, %s2011_s11  }
  0x36   : > { %s2463_s2 = sld [smem:[#allocation20_spill]] }
  0x3c   : > { %s1786_s16 = scalar_lea.hbm %s2463_s2, 96 }
  0x3d   : > { %p1787_p11 = scmp.ne.s32.totalorder %s2463_s2, %s1786_s16  ;;  %p1793_p4 = scmp.lt.u32.totalorder %s1786_s16, %s2463_s2 }
  0x3f   : > { %p1789_p1 = pnand %p1787_p11, %p1760_p12 }
  0x41   : > { %p1790_p2 = pneg %p1789_p1 }
  0x43   : > { %p1795_p6 = pnand %p1793_p4, %p1790_p2 }
  0x45   : > { %1798 = shalt.err (!%p1795_p6)
}
  0x46   : > { %s1799_s7 = scalar_lea.vmem %s2124_s10, 96  ;;  %p1807_p3 = scmp.lt.s32.totalorder %s2124_s10, %s2124_s10 }
  0x47   : > { %p1800_p8 = scmp.ne.s32.totalorder %s2124_s10, %s1799_s7  ;;  %p1808_p5 = scmp.lt.s32.totalorder %s1799_s7, %s1799_s7 }
  0x49   : > { %p1802_p13 = pnand %p1800_p8, %p1760_p12  ;;  %p1809_p7 = por %p1808_p5, %p1807_p3 }
  0x4b   : > { %p1803_p0 = pneg %p1802_p13 }
  0x4d   : > { %p1810_p9 = pnand %p1809_p7, %p1803_p0 }
  0x4f   : > { %1813 = shalt.err (!%p1810_p9)
}
  0x50   : > { %1518 = dma.hbm_to_vmem [thread:$0]  (!%p2120_p10), %s2463_s2, 96, %s2124_s10, [#allocation6]  }
  0x51   : > { %s35_s9 = sadd.s32 1, %s1998_s23  ;;  %s38_s11 = sadd.s32 1, %s2002_s24 }
  0x52   : > { %p36_p12 = scmp.ge.s32.totalorder %s35_s9, 2  ;;  %s47_s8 = sadd.s32 1, %s1986_s20 }
  0x53   : > { %p54_p11 = scmp.ne.s32.totalorder %s1986_s20, %s1982_s19  ;;  %p55_p1 = scmp.eq.s32.totalorder %s2006_s25, 0 }
  0x54   : > { %s2488_s9 = smov (%p36_p12, %s35_s9), 0  ;;  %s2490_s11 = smov (!%p36_p12, %s38_s11), %s2002_s24 }
  0x55   : > { %2464 = sst [smem:[#allocation18_spill]] %s2488_s9  ;;  %s43_s12 = ssub.s32 %s1998_s23, %s2488_s9 }
  0x56   : > { %p2184_p2 = por %p55_p1, %p54_p11  ;;  %p40_p10 = scmp.ge.s32.totalorder %s2490_s11, 2 }
  0x57   : > { %p2466_p4 = scmp.eq.s32.totalorder %s2091_s26, 3  ;;  %p1535_p8 = scmp.lt.s32.totalorder %s2006_s25, 4 }
  0x58   : > { %s234_s14 = sand.u32 1, %s1986_s20   ;;  %s2492_s11 = smov (%p40_p10, %s2490_s11), 0 }
  0x59   : > { %p2190_p6 = por %p2466_p4, %p54_p11  ;;  %s1353_s15 = sshll.u32 %s234_s14, 4 }
  0x5a   : > { %s42_s16 = ssub.s32 %s2002_s24, %s2492_s11  ;;  %s1486_s6 = sshll.u32 %s1998_s23, 2 }
  0x5b   : > { %s44_s17 = sor.u32 %s43_s12, %s42_s16  ;;  %s1356_s7 = sshll.u32 %s2002_s24, 3 }
  0x5c   : > { %p45_p13 = scmp.eq.s32.totalorder %s44_s17, 0  ;;  %s245_s27 = sadd.s32 %s1486_s6, %s1356_s7 }
  0x5d   : > { %s238_s29 = scalar_lea.vmem [#allocation2], %s1353_s15  ;;  %s1357_s9 = sshll.u32 %s245_s27, 6 }
  0x5e   : > { %s248_s1 = sshll.u32 %s238_s29, 4  ;;  %s2210_s4 = scalar_lea.hbm %s2437_s0, %s1357_s9  ;;  %s2205_s1 = int_to_ptr.vmem [resolvable:$true] %s248_s1 }
  0x5f   : > { %s2203_s2 = scalar_select %p45_p13, %s1986_s20, %s47_s8  }
  0x60   : > { %p2216_p0 = pnand %p1535_p8, %p2184_p2  ;;  %s2220_s8 = scalar_lea.sflag [#allocation3], %s234_s14 }
  0x61   : > { %s1814_s15 = scalar_lea.hbm %s2210_s4, 256  ;;  %s1819_s9 = scalar_lea.hbm %s2437_s0, 1024 }
  0x62   : > { %p1815_p3 = scmp.ne.s32.totalorder %s2210_s4, %s1814_s15  ;;  %p1816_p5 = pneg %p2216_p0 }
  0x63   : > { %p1820_p12 = scmp.lt.u32.totalorder %s2210_s4, %s2437_s0  ;;  %p1821_p11 = scmp.lt.u32.totalorder %s1819_s9, %s1814_s15 }
  0x64   : > { %p1817_p7 = pnand %p1816_p5, %p1815_p3  ;;  %p1823_p2 = scmp.lt.u32.totalorder %s1814_s15, %s2210_s4 }
  0x65   : > { %p1822_p1 = por %p1821_p11, %p1820_p12 }
  0x66   : > { %p1818_p9 = pneg %p1817_p7 }
  0x67   : > { %p1824_p10 = por %p1823_p2, %p1822_p1 }
  0x69   : > { %p1825_p4 = pnand %p1824_p10, %p1818_p9 }
  0x6b   : > { %1828 = shalt.err (!%p1825_p4)
}
  0x6c   : > { %s1829_s14 = scalar_lea.vmem %s2205_s1, 256  ;;  %s2012_s17 = smov [#allocation2]  }
  0x6d   : > { %p1830_p8 = scmp.ne.s32.totalorder %s2205_s1, %s1829_s14  ;;  %s1834_s6 = sshll.u32 %s2012_s17, 4  ;;  %s1835_s6 = int_to_ptr.vmem [resolvable:$false] %s1834_s6 }
  0x6e   : > { %s1836_s7 = scalar_lea.vmem %s1835_s6, 512  ;;  %p1837_p7 = scmp.lt.s32.totalorder %s2205_s1, %s1835_s6 }
  0x6f   : > { %p1832_p13 = pnand %p1830_p8, %p1816_p5  ;;  %p1838_p12 = scmp.lt.s32.totalorder %s1836_s7, %s1829_s14 }
  0x71   : > { %p1833_p3 = pneg %p1832_p13  ;;  %p1839_p11 = por %p1838_p12, %p1837_p7 }
  0x73   : > { %p1840_p1 = pnand %p1839_p11, %p1833_p3 }
  0x75   : > { %1843 = shalt.err (!%p1840_p1)
}
  0x76   : > { %s2013_s27 = smov 128   ;;  %s2014_s29 = smov 8  }
  0x77   : > { %1522 = dma.hbm_to_vmem [thread:$0]  (!%p2216_p0), %s2210_s4, 256, %s2205_s1, %s2220_s8, %s2013_s27, %s2013_s27, %s2014_s29  }
  0x78   : > { %p2469_p5 = scmp.ne.s32.totalorder %s2460_s30, 0 }
  0x79   : > { %s2251_s15 = sand.u32 (!%p2469_p5), 1, %s1982_s19   ;;  %p2470_p9 = scmp.ne.s32.totalorder (!%p2469_p5), %s2457_s28, 0 }
  0x7a   : > { %260 = sbr.rel (%p2469_p5) target bundleno = 495 (0x1ef), region = 32  ;;  %s2254_s5 = sshll.u32 (!%p2469_p5), %s2251_s15, 4 }
  0x7b   : > { %s263_s18 = scalar_lea.sflag (!%p2469_p5), [#allocation3], %s2251_s15  ;;  %s266_s9 = scalar_lea.vmem (!%p2469_p5), [#allocation2], %s2254_s5 }
  0x81   : > { %1961 = dma.done.wait (%p2470_p9), %s263_s18, 256  }
  0x82   : > { %1963 = vsyncadd (%p2470_p9), %s263_s18, 4294967040  ;;  %p2471_p0 = scmp.eq.s32.totalorder %s2091_s26, 0 }
  0x84   : > { %1965 = dma.done.wait (%p2471_p0), [#allocation6], 12384   ;;  %p2472_p2 = pmov %p2471_p0 }
  0x85   : > { %v1611_v0 = vld [vmem:[#allocation5 + $0x4] ss:$24 sps:$4 sm:$0xff]   ;;  %v1613_v1 = vld [vmem:[#allocation5] ss:$24 sps:$4 sm:$0xff]   ;;  %v1614_v2 = vld [vmem:[#allocation5 + $0x34] ss:$24 sps:$4 sm:$0xff]  }
  0x86   : > { %1967 = vsyncadd (%p2472_p2), [#allocation6], 4294954912  ;;  %935 = vmatprep.subr.bf16.mxu0 %v1611_v0  ;;  %v1616_v3 = vld [vmem:[#allocation5 + $0x30] ss:$24 sps:$4 sm:$0xff]   ;;  %v1617_v4 = vld [vmem:[#allocation5 + $0x64] ss:$24 sps:$4 sm:$0xff]  }
  0x87   : > { %936 = vmatpush1.bf16.msra.mxu0 %v1613_v1  ;;  %v1619_v5 = vld [vmem:[#allocation5 + $0x60] ss:$24 sps:$4 sm:$0xff]   ;;  %v1620_v6 = vld [vmem:[#allocation5 + $0x94] ss:$24 sps:$4 sm:$0xff]   ;;  %v1622_v7 = vld [vmem:[#allocation5 + $0x90] ss:$24 sps:$4 sm:$0xff]  }
  0x88   : > { %937 = vmatprep.subr.bf16.mxu0 %v1614_v2  ;;  %v1623_v8 = vld [vmem:[#allocation5 + $0xc4] ss:$24 sps:$4 sm:$0xff]   ;;  %v1625_v9 = vld [vmem:[#allocation5 + $0xc0] ss:$24 sps:$4 sm:$0xff]   ;;  %v1626_v10 = vld [vmem:[#allocation5 + $0xf4] ss:$24 sps:$4 sm:$0xff]  }
  0x89   : > { %v1628_v11 = vld [vmem:[#allocation5 + $0xf0] ss:$24 sps:$4 sm:$0xff]   ;;  %v1629_v12 = vld [vmem:[#allocation5 + $0x124] ss:$24 sps:$4 sm:$0xff]   ;;  %v1631_v14 = vld [vmem:[#allocation5 + $0x120] ss:$24 sps:$4 sm:$0xff]  }
  0x8a   : > { %v1658_v13 = vld [vmem:[#allocation5 + $0xc] ss:$24 sps:$4 sm:$0xff]   ;;  %v1661_v15 = vld [vmem:[#allocation5 + $0x8] ss:$24 sps:$4 sm:$0xff]   ;;  %v1665_v18 = vld [vmem:[#allocation5 + $0x3c] ss:$24 sps:$4 sm:$0xff]  }
  0x8b   : > { %938 = vmatpush1.bf16.msra.mxu0 %v1616_v3  ;;  %v1632_v16 = vld [vmem:[#allocation5 + $0x154] ss:$24 sps:$4 sm:$0xff]   ;;  %978 = vmatprep.subr.bf16.mxu1 %v1658_v13  ;;  %v1634_v19 = vld [vmem:[#allocation5 + $0x150] ss:$24 sps:$4 sm:$0xff]   ;;  %v1635_v22 = vld [vmem:[#allocation5 + $0x184] ss:$24 sps:$4 sm:$0xff]  }
  0x8c   : > { %939 = vmatprep.subr.bf16.mxu0 %v1617_v4  ;;  %v2268_v17 = vld [vmem:[%s266_s9 + $0x4] ss:$8 sps:$4 sm:$0xff]   ;;  %979 = vmatpush1.bf16.msra.mxu1 %v1661_v15  ;;  %v1670_v20 = vld [vmem:[#allocation5 + $0x38] ss:$24 sps:$4 sm:$0xff]   ;;  %v1676_v23 = vld [vmem:[#allocation5 + $0x68] ss:$24 sps:$4 sm:$0xff]  }
  0x8d   : > { %967 = vmatprep.mubr.bf16.mxu0 %v2268_v17  ;;  %1010 = vmatprep.mubr.bf16.mxu1 %v2268_v17  ;;  %v1671_v21 = vld [vmem:[#allocation5 + $0x6c] ss:$24 sps:$4 sm:$0xff]   ;;  %v1677_v24 = vld [vmem:[#allocation5 + $0x9c] ss:$24 sps:$4 sm:$0xff]   ;;  %v1637_v25 = vld [vmem:[#allocation5 + $0x180] ss:$24 sps:$4 sm:$0xff]  }
  0x8e   : > { %980 = vmatprep.subr.bf16.mxu1 %v1665_v18  ;;  %v1638_v26 = vld [vmem:[#allocation5 + $0x1b4] ss:$24 sps:$4 sm:$0xff]   ;;  %v1682_v27 = vld [vmem:[#allocation5 + $0x98] ss:$24 sps:$4 sm:$0xff]   ;;  %v1641_v30 = vld [vmem:[#allocation5 + $0x1e4] ss:$24 sps:$4 sm:$0xff]  }
  0x8f   : > { %940 = vmatpush1.bf16.msra.mxu0 %v1619_v5  ;;  %v1683_v28 = vld [vmem:[#allocation5 + $0xcc] ss:$24 sps:$4 sm:$0xff]   ;;  %v1640_v29 = vld [vmem:[#allocation5 + $0x1b0] ss:$24 sps:$4 sm:$0xff]   ;;  %v1689_v32 = vld [vmem:[#allocation5 + $0xfc] ss:$24 sps:$4 sm:$0xff]  }
  0x90   : > { %941 = vmatprep.subr.bf16.mxu0 %v1620_v6  ;;  %981 = vmatpush1.bf16.msra.mxu1 %v1670_v20  ;;  %v1688_v31 = vld [vmem:[#allocation5 + $0xc8] ss:$24 sps:$4 sm:$0xff]   ;;  %v1644_v34 = vld [vmem:[#allocation5 + $0x214] ss:$24 sps:$4 sm:$0xff]   ;;  %v1694_v35 = vld [vmem:[#allocation5 + $0xf8] ss:$24 sps:$4 sm:$0xff]  }
  0x91   : > { %982 = vmatprep.subr.bf16.mxu1 %v1671_v21  ;;  %v1643_v33 = vld [vmem:[#allocation5 + $0x1e0] ss:$24 sps:$4 sm:$0xff]   ;;  %v1695_v36 = vld [vmem:[#allocation5 + $0x12c] ss:$24 sps:$4 sm:$0xff]   ;;  %v1646_v37 = vld [vmem:[#allocation5 + $0x210] ss:$24 sps:$4 sm:$0xff]  }
  0x92   : > { %v1647_v38 = vld [vmem:[#allocation5 + $0x244] ss:$24 sps:$4 sm:$0xff]   ;;  %v1700_v39 = vld [vmem:[#allocation5 + $0x128] ss:$24 sps:$4 sm:$0xff]   ;;  %v1650_v42 = vld [vmem:[#allocation5 + $0x274] ss:$24 sps:$4 sm:$0xff]  }
  0x93   : > { %942 = vmatpush1.bf16.msra.mxu0 %v1622_v7  ;;  %v1701_v40 = vld [vmem:[#allocation5 + $0x15c] ss:$24 sps:$4 sm:$0xff]   ;;  %v1649_v41 = vld [vmem:[#allocation5 + $0x240] ss:$24 sps:$4 sm:$0xff]   ;;  %v1707_v44 = vld [vmem:[#allocation5 + $0x18c] ss:$24 sps:$4 sm:$0xff]  }
  0x94   : > { %943 = vmatprep.subr.bf16.mxu0 %v1623_v8  ;;  %983 = vmatpush1.bf16.msra.mxu1 %v1676_v23  ;;  %v1706_v43 = vld [vmem:[#allocation5 + $0x158] ss:$24 sps:$4 sm:$0xff]   ;;  %v1653_v46 = vld [vmem:[#allocation5 + $0x2a4] ss:$24 sps:$4 sm:$0xff]   ;;  %v1712_v47 = vld [vmem:[#allocation5 + $0x188] ss:$24 sps:$4 sm:$0xff]  }
  0x95   : > { %984 = vmatprep.subr.bf16.mxu1 %v1677_v24  ;;  %v1652_v45 = vld [vmem:[#allocation5 + $0x270] ss:$24 sps:$4 sm:$0xff]   ;;  %v1713_v48 = vld [vmem:[#allocation5 + $0x1bc] ss:$24 sps:$4 sm:$0xff]   ;;  %v1655_v49 = vld [vmem:[#allocation5 + $0x2a0] ss:$24 sps:$4 sm:$0xff]  }
  0x96   : > { %v1656_v50 = vld [vmem:[#allocation5 + $0x2d4] ss:$24 sps:$4 sm:$0xff]   ;;  %v1718_v51 = vld [vmem:[#allocation5 + $0x1b8] ss:$24 sps:$4 sm:$0xff]   ;;  %v1724_v55 = vld [vmem:[#allocation5 + $0x1e8] ss:$24 sps:$4 sm:$0xff]  }
  0x97   : > { %944 = vmatpush1.bf16.msra.mxu0 %v1625_v9  ;;  %v1719_v52 = vld [vmem:[#allocation5 + $0x1ec] ss:$24 sps:$4 sm:$0xff]   ;;  %v1660_v53 = vld [vmem:[#allocation5 + $0x2d0] ss:$24 sps:$4 sm:$0xff]   ;;  %v1725_v56 = vld [vmem:[#allocation5 + $0x21c] ss:$24 sps:$4 sm:$0xff]  }
  0x98   : > { %945 = vmatprep.subr.bf16.mxu0 %v1626_v10  ;;  %985 = vmatpush1.bf16.msra.mxu1 %v1682_v27  ;;  %v1669_v54 = vld [vmem:[#allocation5 + $0x14] ss:$24 sps:$4 sm:$0xff]   ;;  %v2274_v57 = vld [vmem:[%s266_s9] ss:$8 sps:$4 sm:$0xff]   ;;  %v1675_v59 = vld [vmem:[#allocation5 + $0x44] ss:$24 sps:$4 sm:$0xff]  }
  0x99   : > { %986 = vmatprep.subr.bf16.mxu1 %v1683_v28  ;;  %v1667_v58 = vld [vmem:[#allocation5 + $0x10] ss:$24 sps:$4 sm:$0xff]   ;;  %v1731_v61 = vld [vmem:[#allocation5 + $0x24c] ss:$24 sps:$4 sm:$0xff]   ;;  %v1673_v62 = vld [vmem:[#allocation5 + $0x40] ss:$24 sps:$4 sm:$0xff]  }
  0x9a   : > { %v1730_v60 = vld [vmem:[#allocation5 + $0x218] ss:$24 sps:$4 sm:$0xff]   ;;  %v1681_v63 = vld [vmem:[#allocation5 + $0x74] ss:$24 sps:$4 sm:$0xff]   ;;  %v1736_v0 = vld [vmem:[#allocation5 + $0x248] ss:$24 sps:$4 sm:$0xff]  }
  0x9b   : > { %946 = vmatpush1.bf16.msra.mxu0 %v1628_v11  ;;  %v1737_v1 = vld [vmem:[#allocation5 + $0x27c] ss:$24 sps:$4 sm:$0xff]   ;;  %v1679_v2 = vld [vmem:[#allocation5 + $0x70] ss:$24 sps:$4 sm:$0xff]   ;;  %v1743_v5 = vld [vmem:[#allocation5 + $0x2ac] ss:$24 sps:$4 sm:$0xff]  }
  0x9c   : > { %947 = vmatprep.subr.bf16.mxu0 %v1629_v12  ;;  %987 = vmatpush1.bf16.msra.mxu1 %v1688_v31  ;;  %v1687_v3 = vld [vmem:[#allocation5 + $0xa4] ss:$24 sps:$4 sm:$0xff]   ;;  %v1742_v4 = vld [vmem:[#allocation5 + $0x278] ss:$24 sps:$4 sm:$0xff]   ;;  %v1693_v7 = vld [vmem:[#allocation5 + $0xd4] ss:$24 sps:$4 sm:$0xff]  }
  0x9d   : > { %988 = vmatprep.subr.bf16.mxu1 %v1689_v32  ;;  %v1685_v6 = vld [vmem:[#allocation5 + $0xa0] ss:$24 sps:$4 sm:$0xff]   ;;  %v1749_v9 = vld [vmem:[#allocation5 + $0x2dc] ss:$24 sps:$4 sm:$0xff]   ;;  %v1691_v10 = vld [vmem:[#allocation5 + $0xd0] ss:$24 sps:$4 sm:$0xff]  }
  0x9e   : > { %v1748_v8 = vld [vmem:[#allocation5 + $0x2a8] ss:$24 sps:$4 sm:$0xff]   ;;  %v1699_v11 = vld [vmem:[#allocation5 + $0x104] ss:$24 sps:$4 sm:$0xff]   ;;  %v1754_v12 = vld [vmem:[#allocation5 + $0x2d8] ss:$24 sps:$4 sm:$0xff]  }
  0x9f   : > { %948 = vmatpush1.bf16.msra.mxu0 %v1631_v14  ;;  %v1697_v13 = vld [vmem:[#allocation5 + $0x100] ss:$24 sps:$4 sm:$0xff]   ;;  %v1705_v14 = vld [vmem:[#allocation5 + $0x134] ss:$24 sps:$4 sm:$0xff]   ;;  %v1703_v15 = vld [vmem:[#allocation5 + $0x130] ss:$24 sps:$4 sm:$0xff]  }
  0xa0   : > { %949 = vmatprep.subr.bf16.mxu0 %v1632_v16  ;;  %989 = vmatpush1.bf16.msra.mxu1 %v1694_v35  ;;  %v1711_v16 = vld [vmem:[#allocation5 + $0x164] ss:$24 sps:$4 sm:$0xff]   ;;  %v1717_v18 = vld [vmem:[#allocation5 + $0x194] ss:$24 sps:$4 sm:$0xff]   ;;  %v1721_v21 = vld [vmem:[#allocation5 + $0x1c0] ss:$24 sps:$4 sm:$0xff]  }
  0xa1   : > { %990 = vmatprep.subr.bf16.mxu1 %v1695_v36  ;;  %v1723_v20 = vld [vmem:[#allocation5 + $0x1c4] ss:$24 sps:$4 sm:$0xff]   ;;  %v1727_v23 = vld [vmem:[#allocation5 + $0x1f0] ss:$24 sps:$4 sm:$0xff]   ;;  %s1493_s1 = sshll.u32 %s1990_s21, 2  ;;  %s1474_s4 = sshll.u32 %s1994_s22, 3 }
  0xa2   : > { %v1735_v24 = vld [vmem:[#allocation5 + $0x224] ss:$24 sps:$4 sm:$0xff]   ;;  %v1739_v27 = vld [vmem:[#allocation5 + $0x250] ss:$24 sps:$4 sm:$0xff]   ;;  %s1130_s28 = sadd.s32 %s1493_s1, %s1474_s4  ;;  %s296_s30 = scalar_lea.vmem [#allocation8], %s2254_s5 }
  0xa3   : > { %950 = vmatpush1.bf16.msra.mxu0 %v1634_v19  ;;  %v1715_v19 = vld [vmem:[#allocation5 + $0x190] ss:$24 sps:$4 sm:$0xff]   ;;  %v1747_v28 = vld [vmem:[#allocation5 + $0x284] ss:$24 sps:$4 sm:$0xff]   ;;  %s1133_s12 = sshll.u32 %s296_s30, 4  ;;  %s2293_s8 = sshll.u32 %s1130_s28, 6  ;;  %s2295_s12 = int_to_ptr.vmem [resolvable:$true] %s1133_s12 }
  0xa4   : > { %951 = vmatprep.subr.bf16.mxu0 %v1635_v22  ;;  %991 = vmatpush1.bf16.msra.mxu1 %v1700_v39  ;;  %v1729_v22 = vld [vmem:[#allocation5 + $0x1f4] ss:$24 sps:$4 sm:$0xff]   ;;  %v1751_v31 = vld [vmem:[#allocation5 + $0x2b0] ss:$24 sps:$4 sm:$0xff]   ;;  %v1757_v32 = vld [vmem:[#allocation5 + $0x2e4] ss:$24 sps:$4 sm:$0xff]   ;;  %s2301_s13 = scalar_lea.hbm %s2440_s3, %s2293_s8 }
  0xa5   : > { %992 = vmatprep.subr.bf16.mxu1 %v1701_v40  ;;  %s1107_s16 = scalar_lea.sflag [#allocation4], %s2251_s15  ;;  %s1844_s14 = scalar_lea.vmem %s2295_s12, 256 }
  0xa6   : > { %p1845_p10 = scmp.ne.s32.totalorder %s2295_s12, %s1844_s14  ;;  %s2015_s17 = smov [#allocation8]  }
  0xa7   : > { %952 = vmatpush1.bf16.msra.mxu0 %v1637_v25  ;;  %v1733_v25 = vld [vmem:[#allocation5 + $0x220] ss:$24 sps:$4 sm:$0xff]   ;;  %s1848_s6 = sshll.u32 %s2015_s17, 4  ;;  %s1849_s6 = int_to_ptr.vmem [resolvable:$false] %s1848_s6 }
  0xa8   : > { %953 = vmatprep.subr.bf16.mxu0 %v1638_v26  ;;  %993 = vmatpush1.bf16.msra.mxu1 %v1706_v43  ;;  %v1741_v26 = vld [vmem:[#allocation5 + $0x254] ss:$24 sps:$4 sm:$0xff]   ;;  %p1846_p4 = pnand %p1845_p10, %p2190_p6  ;;  %s1850_s7 = scalar_lea.vmem %s1849_s6, 512 }
  0xa9   : > { %994 = vmatprep.subr.bf16.mxu1 %v1707_v44  ;;  %p1851_p13 = scmp.lt.s32.totalorder %s2295_s12, %s1849_s6  ;;  %p1852_p3 = scmp.lt.s32.totalorder %s1850_s7, %s1844_s14 }
  0xaa   : > { %p1847_p8 = pneg %p1846_p4 }
  0xab   : > { %954 = vmatpush1.bf16.msra.mxu0 %v1640_v29  ;;  %v1745_v29 = vld [vmem:[#allocation5 + $0x280] ss:$24 sps:$4 sm:$0xff]   ;;  %p1853_p7 = por %p1852_p3, %p1851_p13 }
  0xac   : > { %955 = vmatprep.subr.bf16.mxu0 %v1641_v30  ;;  %995 = vmatpush1.bf16.msra.mxu1 %v1712_v47  ;;  %v1753_v30 = vld [vmem:[#allocation5 + $0x2b4] ss:$24 sps:$4 sm:$0xff]  }
  0xad   : > { %996 = vmatprep.subr.bf16.mxu1 %v1713_v48  ;;  %p1854_p12 = pnand %p1853_p7, %p1847_p8 }
  0xaf   : > { %956 = vmatpush1.bf16.msra.mxu0 %v1643_v33  ;;  %v1755_v33 = vld [vmem:[#allocation5 + $0x2e0] ss:$24 sps:$4 sm:$0xff]  }
  0xb0   : > { %957 = vmatprep.subr.bf16.mxu0 %v1644_v34  ;;  %997 = vmatpush1.bf16.msra.mxu1 %v1718_v51  ;;  %v415_v34 = vlaneseq }
  0xb1   : > { %998 = vmatprep.subr.bf16.mxu1 %v1719_v52 }
  0xb2   : > { %v2280_v35 = vshrl.u32 %v415_v34, 7 }
  0xb3   : > { %958 = vmatpush1.bf16.msra.mxu0 %v1646_v37  ;;  %v413_v37 = vld [vmem:[#allocation7] sm:$0x3f] }
  0xb4   : > { %959 = vmatprep.subr.bf16.mxu0 %v1647_v38  ;;  %999 = vmatpush1.bf16.msra.mxu1 %v1724_v55  ;;  %v433_v36 = vsub.s32 4, %v2280_v35  ;;  %v437_v39 = vsub.s32 5, %v2280_v35 }
  0xb5   : > { %1000 = vmatprep.subr.bf16.mxu1 %v1725_v56 }
  0xb6   : > { %v2283_v38 = vrot.slane %v413_v37, %v433_v36  ;;  %v2286_v40 = vrot.slane %v413_v37, %v437_v39 }
  0xb7   : > { %960 = vmatpush1.bf16.msra.mxu0 %v1649_v41  ;;  %v417_v41 = vsub.s32 0, %v2280_v35 }
  0xb8   : > { %961 = vmatprep.subr.bf16.mxu0 %v1650_v42  ;;  %1001 = vmatpush1.bf16.msra.mxu1 %v1730_v60  ;;  %v421_v42 = vsub.s32 1, %v2280_v35 }
  0xb9   : > { %1002 = vmatprep.subr.bf16.mxu1 %v1731_v61  ;;  %v418_v43 = vrot.slane %v413_v37, %v417_v41 }
  0xba   : > { %v422_v44 = vrot.slane %v413_v37, %v421_v42 }
  0xbb   : > { %962 = vmatpush1.bf16.msra.mxu0 %v1652_v45 }
  0xbc   : > { %963 = vmatprep.subr.bf16.mxu0 %v1653_v46  ;;  %1003 = vmatpush1.bf16.msra.mxu1 %v1736_v0 }
  0xbd   : > { %1004 = vmatprep.subr.bf16.mxu1 %v1737_v1 }
  0xbf   : > { %964 = vmatpush1.bf16.msra.mxu0 %v1655_v49 }
  0xc0   : > { %965 = vmatprep.subr.bf16.mxu0 %v1656_v50  ;;  %1005 = vmatpush1.bf16.msra.mxu1 %v1742_v4 }
  0xc1   : > { %1006 = vmatprep.subr.bf16.mxu1 %v1743_v5 }
  0xc3   : > { %966 = vmatpush1.bf16.msra.mxu0 %v1660_v53 }
  0xc4   : > { %1021 = vmatprep.subr.bf16.mxu0 %v1669_v54  ;;  %1007 = vmatpush1.bf16.msra.mxu1 %v1748_v8 }
  0xc5   : > { %1008 = vmatprep.subr.bf16.mxu1 %v1749_v9 }
  0xc6   : > { %968 = vmatmul.mubr.bf16.vlgmr.msra.gmra.mrb[0].mxu0 %v2274_v57 }
  0xc7   : > { %1022 = vmatpush1.bf16.msra.mxu0 %v1667_v58  ;;  %1053 = vmatprep.mubr.bf16.mxu0 %v2268_v17  ;;  %v1709_v17 = vld [vmem:[#allocation5 + $0x160] ss:$24 sps:$4 sm:$0xff]  }
  0xc8   : > { %1023 = vmatprep.subr.bf16.mxu0 %v1675_v59  ;;  %1009 = vmatpush1.bf16.msra.mxu1 %v1754_v12 }
  0xcb   : > { %1024 = vmatpush1.bf16.msra.mxu0 %v1673_v62  ;;  %1011 = vmatmul.mubr.bf16.vlgmr.msra.gmra.mrb[0].mxu1 %v2274_v57 }
  0xcc   : > { %1025 = vmatprep.subr.bf16.mxu0 %v1681_v63 }
  0xcf   : > { %1026 = vmatpush1.bf16.msra.mxu0 %v1679_v2 }
  0xd0   : > { %1027 = vmatprep.subr.bf16.mxu0 %v1687_v3 }
  0xd3   : > { %1028 = vmatpush1.bf16.msra.mxu0 %v1685_v6 }
  0xd4   : > { %1029 = vmatprep.subr.bf16.mxu0 %v1693_v7 }
  0xd7   : > { %1030 = vmatpush1.bf16.msra.mxu0 %v1691_v10 }
  0xd8   : > { %1031 = vmatprep.subr.bf16.mxu0 %v1699_v11 }
  0xdb   : > { %1032 = vmatpush1.bf16.msra.mxu0 %v1697_v13 }
  0xdc   : > { %1033 = vmatprep.subr.bf16.mxu0 %v1705_v14 }
  0xdf   : > { %1034 = vmatpush1.bf16.msra.mxu0 %v1703_v15 }
  0xe0   : > { %1035 = vmatprep.subr.bf16.mxu0 %v1711_v16 }
  0xe3   : > { %1036 = vmatpush1.bf16.msra.mxu0 %v1709_v17 }
  0xe4   : > { %1037 = vmatprep.subr.bf16.mxu0 %v1717_v18 }
  0xe7   : > { %1038 = vmatpush1.bf16.msra.mxu0 %v1715_v19 }
  0xe8   : > { %1039 = vmatprep.subr.bf16.mxu0 %v1723_v20 }
  0xeb   : > { %1040 = vmatpush1.bf16.msra.mxu0 %v1721_v21 }
  0xec   : > { %1041 = vmatprep.subr.bf16.mxu0 %v1729_v22 }
  0xef   : > { %1042 = vmatpush1.bf16.msra.mxu0 %v1727_v23 }
  0xf0   : > { %1043 = vmatprep.subr.bf16.mxu0 %v1735_v24 }
  0xf3   : > { %1044 = vmatpush1.bf16.msra.mxu0 %v1733_v25 }
  0xf4   : > { %1045 = vmatprep.subr.bf16.mxu0 %v1741_v26 }
  0xf7   : > { %1046 = vmatpush1.bf16.msra.mxu0 %v1739_v27 }
  0xf8   : > { %1047 = vmatprep.subr.bf16.mxu0 %v1747_v28 }
  0xfb   : > { %1048 = vmatpush1.bf16.msra.mxu0 %v1745_v29 }
  0xfc   : > { %1049 = vmatprep.subr.bf16.mxu0 %v1753_v30 }
  0xff   : > { %1050 = vmatpush1.bf16.msra.mxu0 %v1751_v31 }
 0x100   : > { %1051 = vmatprep.subr.bf16.mxu0 %v1757_v32 }
 0x103   : > { %1052 = vmatpush1.bf16.msra.mxu0 %v1755_v33 }
 0x106   : > { %1054 = vmatmul.mubr.bf16.vlgmr.msra.gmra.mrb[4].mxu0 %v2274_v57 }
 0x199   : > { %v969_v45 = vpop.f32.mrb[0].mxu0 }
 0x19a   : > { %v970_v46 = vadd.f32 %v969_v45, %v418_v43  ;;  %v971_v47 = vpop.f32.mrb[1].mxu0 }
 0x19b   : > { %v972_v48 = vadd.f32 %v971_v47, %v422_v44  ;;  %v973_v49 = vpop.f32.mrb[2].mxu0 }
 0x19c   : > { %v974_v50 = vadd.f32 %v973_v49, %v418_v43  ;;  %v975_v51 = vpop.f32.mrb[3].mxu0 }
 0x19d   : > { %v1487_v52 = vpack.c.bf16 %v972_v48, %v970_v46  ;;  %v976_v53 = vadd.f32 %v975_v51, %v422_v44 }
 0x19f   : > { %1076 = vst [vmem:[%s296_s30] sm:$0xff] %v1487_v52  ;;  %v1488_v54 = vpack.c.bf16 %v976_v53, %v974_v50 }
 0x1a1   : > { %1077 = vst [vmem:[%s296_s30 + $0x8] sm:$0xff] %v1488_v54 }
 0x1a2   : > { %1857 = shalt.err (!%p1854_p12)
}
 0x1a3   : > { %s1858_s27 = scalar_lea.hbm %s2301_s13, 256  ;;  %s1862_s9 = scalar_lea.hbm %s2440_s3, 1024 }
 0x1a4   : > { %p1859_p11 = scmp.ne.s32.totalorder %s2301_s13, %s1858_s27  ;;  %p1863_p9 = scmp.lt.u32.totalorder %s2301_s13, %s2440_s3 }
 0x1a5   : > { %p1864_p0 = scmp.lt.u32.totalorder %s1862_s9, %s1858_s27  ;;  %p1866_p10 = scmp.lt.u32.totalorder %s1858_s27, %s2301_s13 }
 0x1a6   : > { %p1860_p1 = pnand %p1859_p11, %p2190_p6 }
 0x1a7   : > { %p1865_p2 = por %p1864_p0, %p1863_p9 }
 0x1a8   : > { %p1861_p5 = pneg %p1860_p1 }
 0x1a9   : > { %p1867_p4 = por %p1866_p10, %p1865_p2 }
 0x1ab   : > { %p1868_p8 = pnand %p1867_p4, %p1861_p5 }
 0x1ad   : > { %1871 = shalt.err (!%p1868_p8)
}
 0x1ae   : > { %s2016_s28 = smov 128   ;;  %s2017_s30 = smov 8   ;;  %v425_v55 = vsub.s32 2, %v2280_v35  ;;  %v429_v56 = vsub.s32 3, %v2280_v35  ;;  %v1012_v59 = vpop.f32.mrb[0].mxu1 }
 0x1af   : > { %1506 = dma.vmem_to_hbm [thread:$0]  (%p2190_p6), %s2295_s12, 256, %s2301_s13, %s1107_s16, %s2016_s28, %s2016_s28, %s2017_s30   ;;  %v1014_v61 = vpop.f32.mrb[1].mxu1 }
 0x1b0   : > { %v426_v57 = vrot.slane %v413_v37, %v425_v55  ;;  %v430_v58 = vrot.slane %v413_v37, %v429_v56  ;;  %s303_s21 = scalar_lea.vmem [#allocation9], %s2254_s5  ;;  %v1016_v63 = vpop.f32.mrb[2].mxu1  ;;  %s1111_s14 = sand.u32 1, %s2091_s26  }
 0x1b1   : > { %s1152_s22 = sshll.u32 %s303_s21, 4  ;;  %v1018_v1 = vpop.f32.mrb[3].mxu1  ;;  %s2473_s13 = sld [smem:[#allocation21_spill]]  ;;  %s2334_s22 = int_to_ptr.vmem [resolvable:$true] %s1152_s22 }
 0x1b2   : > { %v1013_v60 = vadd.f32 %v1012_v59, %v426_v57  ;;  %v1015_v62 = vadd.f32 %v1014_v61, %v430_v58  ;;  %v1017_v0 = vadd.f32 %v1016_v63, %v426_v57  ;;  %v1019_v3 = vadd.f32 %v1018_v1, %v430_v58  ;;  %s2342_s17 = scalar_lea.sflag [#allocation10], %s1111_s14  ;;  %s1872_s6 = scalar_lea.vmem %s2334_s22, 256 }
 0x1b3   : > { %p1873_p13 = scmp.ne.s32.totalorder %s2334_s22, %s1872_s6  ;;  %s2018_s26 = smov [#allocation9]  }
 0x1b4   : > { %v1489_v2 = vpack.c.bf16 %v1015_v62, %v1013_v60  ;;  %v1490_v4 = vpack.c.bf16 %v1019_v3, %v1017_v0  ;;  %s1876_s7 = sshll.u32 %s2018_s26, 4  ;;  %s1877_s7 = int_to_ptr.vmem [resolvable:$false] %s1876_s7 }
 0x1b5   : > { %p1874_p3 = pnand %p1873_p13, %p2190_p6  ;;  %s1878_s27 = scalar_lea.vmem %s1877_s7, 512 }
 0x1b6   : > { %1090 = vst [vmem:[%s303_s21] sm:$0xff] %v1489_v2  ;;  %1091 = vst [vmem:[%s303_s21 + $0x8] sm:$0xff] %v1490_v4  ;;  %p1879_p12 = scmp.lt.s32.totalorder %s2334_s22, %s1877_s7  ;;  %p1880_p11 = scmp.lt.s32.totalorder %s1878_s27, %s1872_s6 }
 0x1b7   : > { %s2340_s16 = scalar_lea.hbm %s2473_s13, %s2293_s8  ;;  %p1875_p7 = pneg %p1874_p3 }
 0x1b8   : > { %p1881_p1 = por %p1880_p11, %p1879_p12 }
 0x1ba   : > { %p1882_p5 = pnand %p1881_p1, %p1875_p7 }
 0x1bc   : > { %1885 = shalt.err (!%p1882_p5)
}
 0x1bd   : > { %s1886_s29 = scalar_lea.hbm %s2340_s16, 256  ;;  %s1890_s1 = scalar_lea.hbm %s2473_s13, 1024 }
 0x1be   : > { %p1887_p9 = scmp.ne.s32.totalorder %s2340_s16, %s1886_s29  ;;  %p1891_p10 = scmp.lt.u32.totalorder %s2340_s16, %s2473_s13 }
 0x1bf   : > { %p1892_p4 = scmp.lt.u32.totalorder %s1890_s1, %s1886_s29  ;;  %p1894_p13 = scmp.lt.u32.totalorder %s1886_s29, %s2340_s16 }
 0x1c0   : > { %p1888_p0 = pnand %p1887_p9, %p2190_p6 }
 0x1c1   : > { %p1893_p8 = por %p1892_p4, %p1891_p10 }
 0x1c2   : > { %p1889_p2 = pneg %p1888_p0 }
 0x1c3   : > { %p1895_p3 = por %p1894_p13, %p1893_p8 }
 0x1c5   : > { %p1896_p7 = pnand %p1895_p3, %p1889_p2 }
 0x1c7   : > { %1899 = shalt.err (!%p1896_p7)
}
 0x1c8   : > { %1507 = dma.vmem_to_hbm [thread:$0]  (%p2190_p6), %s2334_s22, 256, %s2340_s16, %s2342_s17, %s2016_s28, %s2016_s28, %s2017_s30  }
 0x1c9   : > { %s310_s14 = scalar_lea.vmem [#allocation11], %s2254_s5  ;;  %s2474_s16 = sld [smem:[#allocation22_spill]] }
 0x1ca   : > { %s1171_s15 = sshll.u32 %s310_s14, 4  ;;  %s2019_s26 = smov [#allocation11]   ;;  %s2374_s15 = int_to_ptr.vmem [resolvable:$true] %s1171_s15 }
 0x1cb   : > { %s1900_s5 = scalar_lea.vmem %s2374_s15, 256  ;;  %s1904_s7 = sshll.u32 %s2019_s26, 4  ;;  %s1905_s7 = int_to_ptr.vmem [resolvable:$false] %s1904_s7 }
 0x1cc   : > { %p1901_p12 = scmp.ne.s32.totalorder %s2374_s15, %s1900_s5  ;;  %s1906_s27 = scalar_lea.vmem %s1905_s7, 512 }
 0x1cd   : > { %p1907_p5 = scmp.lt.s32.totalorder %s2374_s15, %s1905_s7  ;;  %p1908_p9 = scmp.lt.s32.totalorder %s1906_s27, %s1900_s5 }
 0x1ce   : > { %p1902_p11 = pnand %p1901_p12, %p2190_p6 }
 0x1cf   : > { %s2380_s6 = scalar_lea.hbm %s2474_s16, %s2293_s8  ;;  %p1909_p0 = por %p1908_p9, %p1907_p5 }
 0x1d0   : > { %p1903_p1 = pneg %p1902_p11 }
 0x1d2   : > { %p1910_p2 = pnand %p1909_p0, %p1903_p1 }
 0x1d9   : > { %v1055_v5 = vpop.f32.mrb[4].mxu0 }
 0x1da   : > { %v1056_v6 = vadd.f32 %v1055_v5, %v2283_v38  ;;  %v1057_v7 = vpop.f32.mrb[5].mxu0 }
 0x1db   : > { %v1058_v8 = vadd.f32 %v1057_v7, %v2286_v40  ;;  %v1059_v9 = vpop.f32.mrb[6].mxu0 }
 0x1dc   : > { %v1060_v10 = vadd.f32 %v1059_v9, %v2283_v38  ;;  %v1061_v11 = vpop.f32.mrb[7].mxu0 }
 0x1dd   : > { %v1491_v12 = vpack.c.bf16 %v1058_v8, %v1056_v6  ;;  %v1062_v13 = vadd.f32 %v1061_v11, %v2286_v40 }
 0x1df   : > { %1104 = vst [vmem:[%s310_s14] sm:$0xff] %v1491_v12  ;;  %v1492_v14 = vpack.c.bf16 %v1062_v13, %v1060_v10 }
 0x1e1   : > { %1105 = vst [vmem:[%s310_s14 + $0x8] sm:$0xff] %v1492_v14 }
 0x1e2   : > { %1913 = shalt.err (!%p1910_p2)
}
 0x1e3   : > { %s1914_s8 = scalar_lea.hbm %s2380_s6, 256  ;;  %s1918_s9 = scalar_lea.hbm %s2474_s16, 1024 }
 0x1e4   : > { %p1915_p10 = scmp.ne.s32.totalorder %s2380_s6, %s1914_s8  ;;  %p1919_p13 = scmp.lt.u32.totalorder %s2380_s6, %s2474_s16 }
 0x1e5   : > { %p1920_p3 = scmp.lt.u32.totalorder %s1918_s9, %s1914_s8  ;;  %p1922_p12 = scmp.lt.u32.totalorder %s1914_s8, %s2380_s6 }
 0x1e6   : > { %p1916_p4 = pnand %p1915_p10, %p2190_p6 }
 0x1e7   : > { %p1921_p7 = por %p1920_p3, %p1919_p13 }
 0x1e8   : > { %p1917_p8 = pneg %p1916_p4 }
 0x1e9   : > { %p1923_p11 = por %p1922_p12, %p1921_p7 }
 0x1eb   : > { %p1924_p1 = pnand %p1923_p11, %p1917_p8 }
 0x1ed   : > { %1927 = shalt.err (!%p1924_p1)
}
 0x1ee   : > { %1508 = dma.vmem_to_hbm [thread:$0]  (%p2190_p6), %s2374_s15, 256, %s2380_s6, %s2342_s17, %s2016_s28, %s2016_s28, %s2017_s30  }
 0x1ef PF: > { %s2475_s21 = sld [smem:[#allocation16_spill]]  ;;  %s2476_s14 = sld [smem:[#allocation17_spill]] }
 0x1f0   : > { %p1538_p5 = scmp.ge.s32.totalorder %s2006_s25, 2 }
 0x1f5   : > { %s1186_s22 = sand.u32 1, %s2475_s21   ;;  %p2477_p9 = scmp.ne.s32.totalorder %s2476_s14, 0 }
 0x1f6   : > { %s1187_s12 = scalar_lea.sflag [#allocation4], %s1186_s22 }
 0x1f7   : > { %p1524_p0 = pnand %p1538_p5, %p2477_p9 }
 0x1f9   : > { %1969 = dma.done.wait (!%p1524_p0), %s1187_s12, 256  }
 0x1fa   : > { %1971 = vsyncadd (!%p1524_p0), %s1187_s12, 4294967040  ;;  %s2478_s10 = sadd.s32 4294967294, %s2006_s25  }
 0x1fb   : > { %s1195_s5 = sand.u32 1, %s2478_s10  }
 0x1fc   : > { %s1196_s26 = scalar_lea.sflag [#allocation10], %s1195_s5 }
 0x1fd   : > { %1973 = dma.done.wait (!%p1524_p0), %s1196_s26, 512  }
 0x1fe   : > { %1975 = vsyncadd (!%p1524_p0), %s1196_s26, 4294966784  ;;  %s26_s25 = sadd.s32 1, %s2006_s25   ;;  %s2479_s28 = sld [smem:[#allocation18_spill]] }
 0x1ff   : > { %p23_p6 = scmp.ge.s32.totalorder %s26_s25, 6   ;;  %s2480_s18 = smov %s1982_s19 }
 0x200   : > { %s2481_s19 = smov %s1986_s20  ;;  %s2482_s20 = smov %s2203_s2 }
 0x201   : > { %s2483_s21 = smov %s1998_s23  ;;  %s2484_s22 = smov %s2002_s24 }
 0x202   : > { %s2486_s24 = smov %s2492_s11  ;;  %25 = sbr.rel (!%p23_p6) target bundleno = 15 (0xf), region = 117 }
 0x204   : > { %s2485_s23 = smov %s2479_s28 }
 0x209   :  { %1210 = vsyncpa [#allocation3], 1 }
 0x20a   :  { %1212 = vsyncpa [#allocation3 + $0x1], 1 }
 0x20b   :  { %1213 = vsyncpa [#allocation6], 1 }
 0x20c   :  { %1214 = vsyncpa [#allocation4], 1 }
 0x20d   :  { %1216 = vsyncpa [#allocation4 + $0x1], 1 }
 0x20e   :  { %1217 = vsyncpa [#allocation10], 1 }
 0x20f   :  { %1219 = vsyncpa [#allocation10 + $0x1], 1 }

// kernel: tpu_custom_call.1
= control target key start
LH: loop header
LB: loop body
LE: loop exit
PB: predicated region body
PF: predicated region fallthrough
CT: control target
= control target key end

     0   :  { %s2437_s0 = inlined_call_operand.hbm [shape: bf16[2,32,256], index: 0, kind: input, shape index: {}]   ;;  %s2438_s1 = inlined_call_operand.hbm [shape: bf16[256,768], index: 1, kind: input, shape index: {}]   ;;  %s2439_s2 = inlined_call_operand.hbm [shape: f32[1,768], index: 2, kind: input, shape index: {}]   ;;  %s2440_s3 = inlined_call_operand.hbm [shape: bf16[2,32,256], index: 3, kind: output, shape index: {0}]   ;;  %s2441_s4 = inlined_call_operand.hbm [shape: bf16[2,32,256], index: 4, kind: output, shape index: {1}]   ;;  %s2442_s5 = inlined_call_operand.hbm [shape: bf16[2,32,256], index: 5, kind: output, shape index: {2}]  }
   0x1   :  { %2452 = sst [smem:[#allocation19_spill]] %s2438_s1 }
   0x2   :  { %2453 = sst [smem:[#allocation20_spill]] %s2439_s2 }
   0x3   :  { %2454 = sst [smem:[#allocation21_spill]] %s2441_s4 }
   0x4   :  { %2455 = sst [smem:[#allocation22_spill]] %s2442_s5 }
   0x5   :  { %11 = vsyncpa [#allocation3], 0 }
   0x6   :  { %13 = vsyncpa [#allocation3 + $0x1], 0 }
   0x7   :  { %14 = vsyncpa [#allocation6], 0 }
   0x8   :  { %15 = vsyncpa [#allocation4], 0 }
   0x9   :  { %17 = vsyncpa [#allocation4 + $0x1], 0 }
   0xa   :  { %18 = vsyncpa [#allocation10], 0 }
   0xb   :  { %20 = vsyncpa [#allocation10 + $0x1], 0  ;;  %s2050_s18 = smov 0   ;;  %s2052_s19 = smov 0  }
   0xc   :  { %s2054_s20 = smov 0   ;;  %s2056_s21 = smov 0  }
   0xd   :  { %s2058_s22 = smov 0   ;;  %s2060_s23 = smov 0  }
   0xe   :  { %s2062_s24 = smov 0   ;;  %s2064_s25 = smov 0  }
   0xf LB: > { %2456 = sst [smem:[#allocation16_spill]] %s1978_s18  ;;  %s2091_s26 = sadd.s32 4294967295, %s2006_s25   ;;  %s2006_s25 = sphi %s2064_s25, %s26_s25   ;;  %s2002_s24 = sphi %s2062_s24, %s2486_s24   ;;  %s1998_s23 = sphi %s2060_s23, %s2485_s23   ;;  %s1994_s22 = sphi %s2058_s22, %s2484_s22   ;;  %s1990_s21 = sphi %s2056_s21, %s2483_s21   ;;  %s1986_s20 = sphi %s2054_s20, %s2482_s20   ;;  %s1982_s19 = sphi %s2052_s19, %s2481_s19   ;;  %s1978_s18 = sphi %s2050_s18, %s2480_s18  }
  0x10   : > { %s2446_s27 = sadd.s32 4294967294, %s2006_s25   ;;  %p60_p0 = scmp.ne.s32.totalorder %s1982_s19, %s1978_s18 }
  0x11   : > { %p2443_p1 = scmp.eq.s32.totalorder %s2091_s26, 0  ;;  %p134_p3 = scmp.eq.s32.totalorder %s2446_s27, 3 }
  0x12   : > { %p1349_p5 = scmp.ge.s32.totalorder %s2006_s25, 1  ;;  %p197_p7 = scmp.lt.s32.totalorder %s2006_s25, 5 }
  0x13   : > { %p2102_p4 = por %p2443_p1, %p60_p0  ;;  %p2107_p6 = por %p134_p3, %p60_p0 }
  0x14   : > { %p2112_p8 = pnand %p1349_p5, %p197_p7  ;;  %s2008_s6 = smov [#allocation5]  }
  0x15   : > { %s2457_s28 = scalar_select %p2102_p4, 1, 0 }
  0x16   : > { %s2458_s29 = scalar_select %p2107_p6, 1, 0 }
  0x17   : > { %s2460_s30 = scalar_select %p2112_p8, 1, 0 }
  0x18   : > { %2459 = sst [smem:[#allocation17_spill]] %s2458_s29  ;;  %s209_s7 = sshll.u32 %s2008_s6, 4  ;;  %s210_s7 = int_to_ptr.vmem [resolvable:$true] %s209_s7 }
  0x19   : > { %p1512_p9 = pneg %p2112_p8  ;;  %s2009_s9 = smov [#allocation7]  }
  0x1a   : > { %s223_s10 = sshll.u32 %s2009_s9, 4  ;;  %s2462_s1 = sld [smem:[#allocation19_spill]]  ;;  %s2124_s10 = int_to_ptr.vmem [resolvable:$true] %s223_s10 }
  0x1b   : > { %p2120_p10 = pnand %p1512_p9, %p2443_p1 }
  0x1d   : > { %p1760_p12 = pneg %p2120_p10 }
  0x20   : > { %s1758_s13 = scalar_lea.hbm %s2462_s1, 12288 }
  0x21   : > { %p1759_p11 = scmp.ne.s32.totalorder %s2462_s1, %s1758_s13  ;;  %p1765_p3 = scmp.lt.u32.totalorder %s1758_s13, %s2462_s1 }
  0x23   : > { %p1761_p13 = pnand %p1760_p12, %p1759_p11 }
  0x25   : > { %p1762_p0 = pneg %p1761_p13 }
  0x27   : > { %p1767_p5 = pnand %p1765_p3, %p1762_p0 }
  0x29   : > { %1770 = shalt.err (!%p1767_p5)
}
  0x2a   : > { %s1771_s6 = scalar_lea.vmem %s210_s7, 12288  ;;  %p1779_p2 = scmp.lt.s32.totalorder %s210_s7, %s210_s7 }
  0x2b   : > { %p1772_p7 = scmp.ne.s32.totalorder %s210_s7, %s1771_s6  ;;  %p1780_p6 = scmp.lt.s32.totalorder %s1771_s6, %s1771_s6 }
  0x2d   : > { %p1774_p9 = pnand %p1772_p7, %p1760_p12  ;;  %p1781_p4 = por %p1780_p6, %p1779_p2 }
  0x2f   : > { %p1775_p1 = pneg %p1774_p9 }
  0x31   : > { %p1782_p8 = pnand %p1781_p4, %p1775_p1 }
  0x33   : > { %1785 = shalt.err (!%p1782_p8)
}
  0x34   : > { %s2010_s9 = smov 384   ;;  %s2011_s11 = smov 24  }
  0x35   : > { %1515 = dma.hbm_to_vmem [thread:$0]  (!%p2120_p10), %s2462_s1, 12288, %s210_s7, [#allocation6], %s2010_s9, %s2010_s9, %s2011_s11  }
  0x36   : > { %s2463_s2 = sld [smem:[#allocation20_spill]] }
  0x3c   : > { %s1786_s16 = scalar_lea.hbm %s2463_s2, 96 }
  0x3d   : > { %p1787_p11 = scmp.ne.s32.totalorder %s2463_s2, %s1786_s16  ;;  %p1793_p4 = scmp.lt.u32.totalorder %s1786_s16, %s2463_s2 }
  0x3f   : > { %p1789_p1 = pnand %p1787_p11, %p1760_p12 }
  0x41   : > { %p1790_p2 = pneg %p1789_p1 }
  0x43   : > { %p1795_p6 = pnand %p1793_p4, %p1790_p2 }
  0x45   : > { %1798 = shalt.err (!%p1795_p6)
}
  0x46   : > { %s1799_s7 = scalar_lea.vmem %s2124_s10, 96  ;;  %p1807_p3 = scmp.lt.s32.totalorder %s2124_s10, %s2124_s10 }
  0x47   : > { %p1800_p8 = scmp.ne.s32.totalorder %s2124_s10, %s1799_s7  ;;  %p1808_p5 = scmp.lt.s32.totalorder %s1799_s7, %s1799_s7 }
  0x49   : > { %p1802_p13 = pnand %p1800_p8, %p1760_p12  ;;  %p1809_p7 = por %p1808_p5, %p1807_p3 }
  0x4b   : > { %p1803_p0 = pneg %p1802_p13 }
  0x4d   : > { %p1810_p9 = pnand %p1809_p7, %p1803_p0 }
  0x4f   : > { %1813 = shalt.err (!%p1810_p9)
}
  0x50   : > { %1518 = dma.hbm_to_vmem [thread:$0]  (!%p2120_p10), %s2463_s2, 96, %s2124_s10, [#allocation6]  }
  0x51   : > { %s35_s9 = sadd.s32 1, %s1998_s23  ;;  %s38_s11 = sadd.s32 1, %s2002_s24 }
  0x52   : > { %p36_p12 = scmp.ge.s32.totalorder %s35_s9, 2  ;;  %s47_s8 = sadd.s32 1, %s1986_s20 }
  0x53   : > { %p54_p11 = scmp.ne.s32.totalorder %s1986_s20, %s1982_s19  ;;  %p55_p1 = scmp.eq.s32.totalorder %s2006_s25, 0 }
  0x54   : > { %s2488_s9 = smov (%p36_p12, %s35_s9), 0  ;;  %s2490_s11 = smov (!%p36_p12, %s38_s11), %s2002_s24 }
  0x55   : > { %2464 = sst [smem:[#allocation18_spill]] %s2488_s9  ;;  %s43_s12 = ssub.s32 %s1998_s23, %s2488_s9 }
  0x56   : > { %p2184_p2 = por %p55_p1, %p54_p11  ;;  %p40_p10 = scmp.ge.s32.totalorder %s2490_s11, 2 }
  0x57   : > { %p2466_p4 = scmp.eq.s32.totalorder %s2091_s26, 3  ;;  %p1535_p8 = scmp.lt.s32.totalorder %s2006_s25, 4 }
  0x58   : > { %s234_s14 = sand.u32 1, %s1986_s20   ;;  %s2492_s11 = smov (%p40_p10, %s2490_s11), 0 }
  0x59   : > { %p2190_p6 = por %p2466_p4, %p54_p11  ;;  %s1353_s15 = sshll.u32 %s234_s14, 4 }
  0x5a   : > { %s42_s16 = ssub.s32 %s2002_s24, %s2492_s11  ;;  %s1486_s6 = sshll.u32 %s1998_s23, 2 }
  0x5b   : > { %s44_s17 = sor.u32 %s43_s12, %s42_s16  ;;  %s1356_s7 = sshll.u32 %s2002_s24, 3 }
  0x5c   : > { %p45_p13 = scmp.eq.s32.totalorder %s44_s17, 0  ;;  %s245_s27 = sadd.s32 %s1486_s6, %s1356_s7 }
  0x5d   : > { %s238_s29 = scalar_lea.vmem [#allocation2], %s1353_s15  ;;  %s1357_s9 = sshll.u32 %s245_s27, 6 }
  0x5e   : > { %s248_s1 = sshll.u32 %s238_s29, 4  ;;  %s2210_s4 = scalar_lea.hbm %s2437_s0, %s1357_s9  ;;  %s2205_s1 = int_to_ptr.vmem [resolvable:$true] %s248_s1 }
  0x5f   : > { %s2203_s2 = scalar_select %p45_p13, %s1986_s20, %s47_s8  }
  0x60   : > { %p2216_p0 = pnand %p1535_p8, %p2184_p2  ;;  %s2220_s8 = scalar_lea.sflag [#allocation3], %s234_s14 }
  0x61   : > { %s1814_s15 = scalar_lea.hbm %s2210_s4, 256  ;;  %s1819_s9 = scalar_lea.hbm %s2437_s0, 1024 }
  0x62   : > { %p1815_p3 = scmp.ne.s32.totalorder %s2210_s4, %s1814_s15  ;;  %p1816_p5 = pneg %p2216_p0 }
  0x63   : > { %p1820_p12 = scmp.lt.u32.totalorder %s2210_s4, %s2437_s0  ;;  %p1821_p11 = scmp.lt.u32.totalorder %s1819_s9, %s1814_s15 }
  0x64   : > { %p1817_p7 = pnand %p1816_p5, %p1815_p3  ;;  %p1823_p2 = scmp.lt.u32.totalorder %s1814_s15, %s2210_s4 }
  0x65   : > { %p1822_p1 = por %p1821_p11, %p1820_p12 }
  0x66   : > { %p1818_p9 = pneg %p1817_p7 }
  0x67   : > { %p1824_p10 = por %p1823_p2, %p1822_p1 }
  0x69   : > { %p1825_p4 = pnand %p1824_p10, %p1818_p9 }
  0x6b   : > { %1828 = shalt.err (!%p1825_p4)
}
  0x6c   : > { %s1829_s14 = scalar_lea.vmem %s2205_s1, 256  ;;  %s2012_s17 = smov [#allocation2]  }
  0x6d   : > { %p1830_p8 = scmp.ne.s32.totalorder %s2205_s1, %s1829_s14  ;;  %s1834_s6 = sshll.u32 %s2012_s17, 4  ;;  %s1835_s6 = int_to_ptr.vmem [resolvable:$false] %s1834_s6 }
  0x6e   : > { %s1836_s7 = scalar_lea.vmem %s1835_s6, 512  ;;  %p1837_p7 = scmp.lt.s32.totalorder %s2205_s1, %s1835_s6 }
  0x6f   : > { %p1832_p13 = pnand %p1830_p8, %p1816_p5  ;;  %p1838_p12 = scmp.lt.s32.totalorder %s1836_s7, %s1829_s14 }
  0x71   : > { %p1833_p3 = pneg %p1832_p13  ;;  %p1839_p11 = por %p1838_p12, %p1837_p7 }
  0x73   : > { %p1840_p1 = pnand %p1839_p11, %p1833_p3 }
  0x75   : > { %1843 = shalt.err (!%p1840_p1)
}
  0x76   : > { %s2013_s27 = smov 128   ;;  %s2014_s29 = smov 8  }
  0x77   : > { %1522 = dma.hbm_to_vmem [thread:$0]  (!%p2216_p0), %s2210_s4, 256, %s2205_s1, %s2220_s8, %s2013_s27, %s2013_s27, %s2014_s29  }
  0x78   : > { %p2469_p5 = scmp.ne.s32.totalorder %s2460_s30, 0 }
  0x79   : > { %s2251_s15 = sand.u32 (!%p2469_p5), 1, %s1982_s19   ;;  %p2470_p9 = scmp.ne.s32.totalorder (!%p2469_p5), %s2457_s28, 0 }
  0x7a   : > { %260 = sbr.rel (%p2469_p5) target bundleno = 495 (0x1ef), region = 32  ;;  %s2254_s5 = sshll.u32 (!%p2469_p5), %s2251_s15, 4 }
  0x7b   : > { %s263_s18 = scalar_lea.sflag (!%p2469_p5), [#allocation3], %s2251_s15  ;;  %s266_s9 = scalar_lea.vmem (!%p2469_p5), [#allocation2], %s2254_s5 }
  0x81   : > { %1961 = dma.done.wait (%p2470_p9), %s263_s18, 256  }
  0x82   : > { %1963 = vsyncadd (%p2470_p9), %s263_s18, 4294967040  ;;  %p2471_p0 = scmp.eq.s32.totalorder %s2091_s26, 0 }
  0x84   : > { %1965 = dma.done.wait (%p2471_p0), [#allocation6], 12384   ;;  %p2472_p2 = pmov %p2471_p0 }
  0x85   : > { %v1611_v0 = vld [vmem:[#allocation5 + $0x4] ss:$24 sps:$4 sm:$0xff]   ;;  %v1613_v1 = vld [vmem:[#allocation5] ss:$24 sps:$4 sm:$0xff]   ;;  %v1614_v2 = vld [vmem:[#allocation5 + $0x34] ss:$24 sps:$4 sm:$0xff]  }
  0x86   : > { %1967 = vsyncadd (%p2472_p2), [#allocation6], 4294954912  ;;  %935 = vmatprep.subr.bf16.mxu0 %v1611_v0  ;;  %v1616_v3 = vld [vmem:[#allocation5 + $0x30] ss:$24 sps:$4 sm:$0xff]   ;;  %v1617_v4 = vld [vmem:[#allocation5 + $0x64] ss:$24 sps:$4 sm:$0xff]  }
  0x87   : > { %936 = vmatpush1.bf16.msra.mxu0 %v1613_v1  ;;  %v1619_v5 = vld [vmem:[#allocation5 + $0x60] ss:$24 sps:$4 sm:$0xff]   ;;  %v1620_v6 = vld [vmem:[#allocation5 + $0x94] ss:$24 sps:$4 sm:$0xff]   ;;  %v1622_v7 = vld [vmem:[#allocation5 + $0x90] ss:$24 sps:$4 sm:$0xff]  }
  0x88   : > { %937 = vmatprep.subr.bf16.mxu0 %v1614_v2  ;;  %v1623_v8 = vld [vmem:[#allocation5 + $0xc4] ss:$24 sps:$4 sm:$0xff]   ;;  %v1625_v9 = vld [vmem:[#allocation5 + $0xc0] ss:$24 sps:$4 sm:$0xff]   ;;  %v1626_v10 = vld [vmem:[#allocation5 + $0xf4] ss:$24 sps:$4 sm:$0xff]  }
  0x89   : > { %v1628_v11 = vld [vmem:[#allocation5 + $0xf0] ss:$24 sps:$4 sm:$0xff]   ;;  %v1629_v12 = vld [vmem:[#allocation5 + $0x124] ss:$24 sps:$4 sm:$0xff]   ;;  %v1631_v14 = vld [vmem:[#allocation5 + $0x120] ss:$24 sps:$4 sm:$0xff]  }
  0x8a   : > { %v1658_v13 = vld [vmem:[#allocation5 + $0xc] ss:$24 sps:$4 sm:$0xff]   ;;  %v1661_v15 = vld [vmem:[#allocation5 + $0x8] ss:$24 sps:$4 sm:$0xff]   ;;  %v1665_v18 = vld [vmem:[#allocation5 + $0x3c] ss:$24 sps:$4 sm:$0xff]  }
  0x8b   : > { %938 = vmatpush1.bf16.msra.mxu0 %v1616_v3  ;;  %v1632_v16 = vld [vmem:[#allocation5 + $0x154] ss:$24 sps:$4 sm:$0xff]   ;;  %978 = vmatprep.subr.bf16.mxu1 %v1658_v13  ;;  %v1634_v19 = vld [vmem:[#allocation5 + $0x150] ss:$24 sps:$4 sm:$0xff]   ;;  %v1635_v22 = vld [vmem:[#allocation5 + $0x184] ss:$24 sps:$4 sm:$0xff]  }
  0x8c   : > { %939 = vmatprep.subr.bf16.mxu0 %v1617_v4  ;;  %v2268_v17 = vld [vmem:[%s266_s9 + $0x4] ss:$8 sps:$4 sm:$0xff]   ;;  %979 = vmatpush1.bf16.msra.mxu1 %v1661_v15  ;;  %v1670_v20 = vld [vmem:[#allocation5 + $0x38] ss:$24 sps:$4 sm:$0xff]   ;;  %v1676_v23 = vld [vmem:[#allocation5 + $0x68] ss:$24 sps:$4 sm:$0xff]  }
  0x8d   : > { %967 = vmatprep.mubr.bf16.mxu0 %v2268_v17  ;;  %1010 = vmatprep.mubr.bf16.mxu1 %v2268_v17  ;;  %v1671_v21 = vld [vmem:[#allocation5 + $0x6c] ss:$24 sps:$4 sm:$0xff]   ;;  %v1677_v24 = vld [vmem:[#allocation5 + $0x9c] ss:$24 sps:$4 sm:$0xff]   ;;  %v1637_v25 = vld [vmem:[#allocation5 + $0x180] ss:$24 sps:$4 sm:$0xff]  }
  0x8e   : > { %980 = vmatprep.subr.bf16.mxu1 %v1665_v18  ;;  %v1638_v26 = vld [vmem:[#allocation5 + $0x1b4] ss:$24 sps:$4 sm:$0xff]   ;;  %v1682_v27 = vld [vmem:[#allocation5 + $0x98] ss:$24 sps:$4 sm:$0xff]   ;;  %v1641_v30 = vld [vmem:[#allocation5 + $0x1e4] ss:$24 sps:$4 sm:$0xff]  }
  0x8f   : > { %940 = vmatpush1.bf16.msra.mxu0 %v1619_v5  ;;  %v1683_v28 = vld [vmem:[#allocation5 + $0xcc] ss:$24 sps:$4 sm:$0xff]   ;;  %v1640_v29 = vld [vmem:[#allocation5 + $0x1b0] ss:$24 sps:$4 sm:$0xff]   ;;  %v1689_v32 = vld [vmem:[#allocation5 + $0xfc] ss:$24 sps:$4 sm:$0xff]  }
  0x90   : > { %941 = vmatprep.subr.bf16.mxu0 %v1620_v6  ;;  %981 = vmatpush1.bf16.msra.mxu1 %v1670_v20  ;;  %v1688_v31 = vld [vmem:[#allocation5 + $0xc8] ss:$24 sps:$4 sm:$0xff]   ;;  %v1644_v34 = vld [vmem:[#allocation5 + $0x214] ss:$24 sps:$4 sm:$0xff]   ;;  %v1694_v35 = vld [vmem:[#allocation5 + $0xf8] ss:$24 sps:$4 sm:$0xff]  }
  0x91   : > { %982 = vmatprep.subr.bf16.mxu1 %v1671_v21  ;;  %v1643_v33 = vld [vmem:[#allocation5 + $0x1e0] ss:$24 sps:$4 sm:$0xff]   ;;  %v1695_v36 = vld [vmem:[#allocation5 + $0x12c] ss:$24 sps:$4 sm:$0xff]   ;;  %v1646_v37 = vld [vmem:[#allocation5 + $0x210] ss:$24 sps:$4 sm:$0xff]  }
  0x92   : > { %v1647_v38 = vld [vmem:[#allocation5 + $0x244] ss:$24 sps:$4 sm:$0xff]   ;;  %v1700_v39 = vld [vmem:[#allocation5 + $0x128] ss:$24 sps:$4 sm:$0xff]   ;;  %v1650_v42 = vld [vmem:[#allocation5 + $0x274] ss:$24 sps:$4 sm:$0xff]  }
  0x93   : > { %942 = vmatpush1.bf16.msra.mxu0 %v1622_v7  ;;  %v1701_v40 = vld [vmem:[#allocation5 + $0x15c] ss:$24 sps:$4 sm:$0xff]   ;;  %v1649_v41 = vld [vmem:[#allocation5 + $0x240] ss:$24 sps:$4 sm:$0xff]   ;;  %v1707_v44 = vld [vmem:[#allocation5 + $0x18c] ss:$24 sps:$4 sm:$0xff]  }
  0x94   : > { %943 = vmatprep.subr.bf16.mxu0 %v1623_v8  ;;  %983 = vmatpush1.bf16.msra.mxu1 %v1676_v23  ;;  %v1706_v43 = vld [vmem:[#allocation5 + $0x158] ss:$24 sps:$4 sm:$0xff]   ;;  %v1653_v46 = vld [vmem:[#allocation5 + $0x2a4] ss:$24 sps:$4 sm:$0xff]   ;;  %v1712_v47 = vld [vmem:[#allocation5 + $0x188] ss:$24 sps:$4 sm:$0xff]  }
  0x95   : > { %984 = vmatprep.subr.bf16.mxu1 %v1677_v24  ;;  %v1652_v45 = vld [vmem:[#allocation5 + $0x270] ss:$24 sps:$4 sm:$0xff]   ;;  %v1713_v48 = vld [vmem:[#allocation5 + $0x1bc] ss:$24 sps:$4 sm:$0xff]   ;;  %v1655_v49 = vld [vmem:[#allocation5 + $0x2a0] ss:$24 sps:$4 sm:$0xff]  }
  0x96   : > { %v1656_v50 = vld [vmem:[#allocation5 + $0x2d4] ss:$24 sps:$4 sm:$0xff]   ;;  %v1718_v51 = vld [vmem:[#allocation5 + $0x1b8] ss:$24 sps:$4 sm:$0xff]   ;;  %v1724_v55 = vld [vmem:[#allocation5 + $0x1e8] ss:$24 sps:$4 sm:$0xff]  }
  0x97   : > { %944 = vmatpush1.bf16.msra.mxu0 %v1625_v9  ;;  %v1719_v52 = vld [vmem:[#allocation5 + $0x1ec] ss:$24 sps:$4 sm:$0xff]   ;;  %v1660_v53 = vld [vmem:[#allocation5 + $0x2d0] ss:$24 sps:$4 sm:$0xff]   ;;  %v1725_v56 = vld [vmem:[#allocation5 + $0x21c] ss:$24 sps:$4 sm:$0xff]  }
  0x98   : > { %945 = vmatprep.subr.bf16.mxu0 %v1626_v10  ;;  %985 = vmatpush1.bf16.msra.mxu1 %v1682_v27  ;;  %v1669_v54 = vld [vmem:[#allocation5 + $0x14] ss:$24 sps:$4 sm:$0xff]   ;;  %v2274_v57 = vld [vmem:[%s266_s9] ss:$8 sps:$4 sm:$0xff]   ;;  %v1675_v59 = vld [vmem:[#allocation5 + $0x44] ss:$24 sps:$4 sm:$0xff]  }
  0x99   : > { %986 = vmatprep.subr.bf16.mxu1 %v1683_v28  ;;  %v1667_v58 = vld [vmem:[#allocation5 + $0x10] ss:$24 sps:$4 sm:$0xff]   ;;  %v1731_v61 = vld [vmem:[#allocation5 + $0x24c] ss:$24 sps:$4 sm:$0xff]   ;;  %v1673_v62 = vld [vmem:[#allocation5 + $0x40] ss:$24 sps:$4 sm:$0xff]  }
  0x9a   : > { %v1730_v60 = vld [vmem:[#allocation5 + $0x218] ss:$24 sps:$4 sm:$0xff]   ;;  %v1681_v63 = vld [vmem:[#allocation5 + $0x74] ss:$24 sps:$4 sm:$0xff]   ;;  %v1736_v0 = vld [vmem:[#allocation5 + $0x248] ss:$24 sps:$4 sm:$0xff]  }
  0x9b   : > { %946 = vmatpush1.bf16.msra.mxu0 %v1628_v11  ;;  %v1737_v1 = vld [vmem:[#allocation5 + $0x27c] ss:$24 sps:$4 sm:$0xff]   ;;  %v1679_v2 = vld [vmem:[#allocation5 + $0x70] ss:$24 sps:$4 sm:$0xff]   ;;  %v1743_v5 = vld [vmem:[#allocation5 + $0x2ac] ss:$24 sps:$4 sm:$0xff]  }
  0x9c   : > { %947 = vmatprep.subr.bf16.mxu0 %v1629_v12  ;;  %987 = vmatpush1.bf16.msra.mxu1 %v1688_v31  ;;  %v1687_v3 = vld [vmem:[#allocation5 + $0xa4] ss:$24 sps:$4 sm:$0xff]   ;;  %v1742_v4 = vld [vmem:[#allocation5 + $0x278] ss:$24 sps:$4 sm:$0xff]   ;;  %v1693_v7 = vld [vmem:[#allocation5 + $0xd4] ss:$24 sps:$4 sm:$0xff]  }
  0x9d   : > { %988 = vmatprep.subr.bf16.mxu1 %v1689_v32  ;;  %v1685_v6 = vld [vmem:[#allocation5 + $0xa0] ss:$24 sps:$4 sm:$0xff]   ;;  %v1749_v9 = vld [vmem:[#allocation5 + $0x2dc] ss:$24 sps:$4 sm:$0xff]   ;;  %v1691_v10 = vld [vmem:[#allocation5 + $0xd0] ss:$24 sps:$4 sm:$0xff]  }
  0x9e   : > { %v1748_v8 = vld [vmem:[#allocation5 + $0x2a8] ss:$24 sps:$4 sm:$0xff]   ;;  %v1699_v11 = vld [vmem:[#allocation5 + $0x104] ss:$24 sps:$4 sm:$0xff]   ;;  %v1754_v12 = vld [vmem:[#allocation5 + $0x2d8] ss:$24 sps:$4 sm:$0xff]  }
  0x9f   : > { %948 = vmatpush1.bf16.msra.mxu0 %v1631_v14  ;;  %v1697_v13 = vld [vmem:[#allocation5 + $0x100] ss:$24 sps:$4 sm:$0xff]   ;;  %v1705_v14 = vld [vmem:[#allocation5 + $0x134] ss:$24 sps:$4 sm:$0xff]   ;;  %v1703_v15 = vld [vmem:[#allocation5 + $0x130] ss:$24 sps:$4 sm:$0xff]  }
  0xa0   : > { %949 = vmatprep.subr.bf16.mxu0 %v1632_v16  ;;  %989 = vmatpush1.bf16.msra.mxu1 %v1694_v35  ;;  %v1711_v16 = vld [vmem:[#allocation5 + $0x164] ss:$24 sps:$4 sm:$0xff]   ;;  %v1717_v18 = vld [vmem:[#allocation5 + $0x194] ss:$24 sps:$4 sm:$0xff]   ;;  %v1721_v21 = vld [vmem:[#allocation5 + $0x1c0] ss:$24 sps:$4 sm:$0xff]  }
  0xa1   : > { %990 = vmatprep.subr.bf16.mxu1 %v1695_v36  ;;  %v1723_v20 = vld [vmem:[#allocation5 + $0x1c4] ss:$24 sps:$4 sm:$0xff]   ;;  %v1727_v23 = vld [vmem:[#allocation5 + $0x1f0] ss:$24 sps:$4 sm:$0xff]   ;;  %s1493_s1 = sshll.u32 %s1990_s21, 2  ;;  %s1474_s4 = sshll.u32 %s1994_s22, 3 }
  0xa2   : > { %v1735_v24 = vld [vmem:[#allocation5 + $0x224] ss:$24 sps:$4 sm:$0xff]   ;;  %v1739_v27 = vld [vmem:[#allocation5 + $0x250] ss:$24 sps:$4 sm:$0xff]   ;;  %s1130_s28 = sadd.s32 %s1493_s1, %s1474_s4  ;;  %s296_s30 = scalar_lea.vmem [#allocation8], %s2254_s5 }
  0xa3   : > { %950 = vmatpush1.bf16.msra.mxu0 %v1634_v19  ;;  %v1715_v19 = vld [vmem:[#allocation5 + $0x190] ss:$24 sps:$4 sm:$0xff]   ;;  %v1747_v28 = vld [vmem:[#allocation5 + $0x284] ss:$24 sps:$4 sm:$0xff]   ;;  %s1133_s12 = sshll.u32 %s296_s30, 4  ;;  %s2293_s8 = sshll.u32 %s1130_s28, 6  ;;  %s2295_s12 = int_to_ptr.vmem [resolvable:$true] %s1133_s12 }
  0xa4   : > { %951 = vmatprep.subr.bf16.mxu0 %v1635_v22  ;;  %991 = vmatpush1.bf16.msra.mxu1 %v1700_v39  ;;  %v1729_v22 = vld [vmem:[#allocation5 + $0x1f4] ss:$24 sps:$4 sm:$0xff]   ;;  %v1751_v31 = vld [vmem:[#allocation5 + $0x2b0] ss:$24 sps:$4 sm:$0xff]   ;;  %v1757_v32 = vld [vmem:[#allocation5 + $0x2e4] ss:$24 sps:$4 sm:$0xff]   ;;  %s2301_s13 = scalar_lea.hbm %s2440_s3, %s2293_s8 }
  0xa5   : > { %992 = vmatprep.subr.bf16.mxu1 %v1701_v40  ;;  %s1107_s16 = scalar_lea.sflag [#allocation4], %s2251_s15  ;;  %s1844_s14 = scalar_lea.vmem %s2295_s12, 256 }
  0xa6   : > { %p1845_p10 = scmp.ne.s32.totalorder %s2295_s12, %s1844_s14  ;;  %s2015_s17 = smov [#allocation8]  }
  0xa7   : > { %952 = vmatpush1.bf16.msra.mxu0 %v1637_v25  ;;  %v1733_v25 = vld [vmem:[#allocation5 + $0x220] ss:$24 sps:$4 sm:$0xff]   ;;  %s1848_s6 = sshll.u32 %s2015_s17, 4  ;;  %s1849_s6 = int_to_ptr.vmem [resolvable:$false] %s1848_s6 }
  0xa8   : > { %953 = vmatprep.subr.bf16.mxu0 %v1638_v26  ;;  %993 = vmatpush1.bf16.msra.mxu1 %v1706_v43  ;;  %v1741_v26 = vld [vmem:[#allocation5 + $0x254] ss:$24 sps:$4 sm:$0xff]   ;;  %p1846_p4 = pnand %p1845_p10, %p2190_p6  ;;  %s1850_s7 = scalar_lea.vmem %s1849_s6, 512 }
  0xa9   : > { %994 = vmatprep.subr.bf16.mxu1 %v1707_v44  ;;  %p1851_p13 = scmp.lt.s32.totalorder %s2295_s12, %s1849_s6  ;;  %p1852_p3 = scmp.lt.s32.totalorder %s1850_s7, %s1844_s14 }
  0xaa   : > { %p1847_p8 = pneg %p1846_p4 }
  0xab   : > { %954 = vmatpush1.bf16.msra.mxu0 %v1640_v29  ;;  %v1745_v29 = vld [vmem:[#allocation5 + $0x280] ss:$24 sps:$4 sm:$0xff]   ;;  %p1853_p7 = por %p1852_p3, %p1851_p13 }
  0xac   : > { %955 = vmatprep.subr.bf16.mxu0 %v1641_v30  ;;  %995 = vmatpush1.bf16.msra.mxu1 %v1712_v47  ;;  %v1753_v30 = vld [vmem:[#allocation5 + $0x2b4] ss:$24 sps:$4 sm:$0xff]  }
  0xad   : > { %996 = vmatprep.subr.bf16.mxu1 %v1713_v48  ;;  %p1854_p12 = pnand %p1853_p7, %p1847_p8 }
  0xaf   : > { %956 = vmatpush1.bf16.msra.mxu0 %v1643_v33  ;;  %v1755_v33 = vld [vmem:[#allocation5 + $0x2e0] ss:$24 sps:$4 sm:$0xff]  }
  0xb0   : > { %957 = vmatprep.subr.bf16.mxu0 %v1644_v34  ;;  %997 = vmatpush1.bf16.msra.mxu1 %v1718_v51  ;;  %v415_v34 = vlaneseq }
  0xb1   : > { %998 = vmatprep.subr.bf16.mxu1 %v1719_v52 }
  0xb2   : > { %v2280_v35 = vshrl.u32 %v415_v34, 7 }
  0xb3   : > { %958 = vmatpush1.bf16.msra.mxu0 %v1646_v37  ;;  %v413_v37 = vld [vmem:[#allocation7] sm:$0x3f] }
  0xb4   : > { %959 = vmatprep.subr.bf16.mxu0 %v1647_v38  ;;  %999 = vmatpush1.bf16.msra.mxu1 %v1724_v55  ;;  %v433_v36 = vsub.s32 4, %v2280_v35  ;;  %v437_v39 = vsub.s32 5, %v2280_v35 }
  0xb5   : > { %1000 = vmatprep.subr.bf16.mxu1 %v1725_v56 }
  0xb6   : > { %v2283_v38 = vrot.slane %v413_v37, %v433_v36  ;;  %v2286_v40 = vrot.slane %v413_v37, %v437_v39 }
  0xb7   : > { %960 = vmatpush1.bf16.msra.mxu0 %v1649_v41  ;;  %v417_v41 = vsub.s32 0, %v2280_v35 }
  0xb8   : > { %961 = vmatprep.subr.bf16.mxu0 %v1650_v42  ;;  %1001 = vmatpush1.bf16.msra.mxu1 %v1730_v60  ;;  %v421_v42 = vsub.s32 1, %v2280_v35 }
  0xb9   : > { %1002 = vmatprep.subr.bf16.mxu1 %v1731_v61  ;;  %v418_v43 = vrot.slane %v413_v37, %v417_v41 }
  0xba   : > { %v422_v44 = vrot.slane %v413_v37, %v421_v42 }
  0xbb   : > { %962 = vmatpush1.bf16.msra.mxu0 %v1652_v45 }
  0xbc   : > { %963 = vmatprep.subr.bf16.mxu0 %v1653_v46  ;;  %1003 = vmatpush1.bf16.msra.mxu1 %v1736_v0 }
  0xbd   : > { %1004 = vmatprep.subr.bf16.mxu1 %v1737_v1 }
  0xbf   : > { %964 = vmatpush1.bf16.msra.mxu0 %v1655_v49 }
  0xc0   : > { %965 = vmatprep.subr.bf16.mxu0 %v1656_v50  ;;  %1005 = vmatpush1.bf16.msra.mxu1 %v1742_v4 }
  0xc1   : > { %1006 = vmatprep.subr.bf16.mxu1 %v1743_v5 }
  0xc3   : > { %966 = vmatpush1.bf16.msra.mxu0 %v1660_v53 }
  0xc4   : > { %1021 = vmatprep.subr.bf16.mxu0 %v1669_v54  ;;  %1007 = vmatpush1.bf16.msra.mxu1 %v1748_v8 }
  0xc5   : > { %1008 = vmatprep.subr.bf16.mxu1 %v1749_v9 }
  0xc6   : > { %968 = vmatmul.mubr.bf16.vlgmr.msra.gmra.mrb[0].mxu0 %v2274_v57 }
  0xc7   : > { %1022 = vmatpush1.bf16.msra.mxu0 %v1667_v58  ;;  %1053 = vmatprep.mubr.bf16.mxu0 %v2268_v17  ;;  %v1709_v17 = vld [vmem:[#allocation5 + $0x160] ss:$24 sps:$4 sm:$0xff]  }
  0xc8   : > { %1023 = vmatprep.subr.bf16.mxu0 %v1675_v59  ;;  %1009 = vmatpush1.bf16.msra.mxu1 %v1754_v12 }
  0xcb   : > { %1024 = vmatpush1.bf16.msra.mxu0 %v1673_v62  ;;  %1011 = vmatmul.mubr.bf16.vlgmr.msra.gmra.mrb[0].mxu1 %v2274_v57 }
  0xcc   : > { %1025 = vmatprep.subr.bf16.mxu0 %v1681_v63 }
  0xcf   : > { %1026 = vmatpush1.bf16.msra.mxu0 %v1679_v2 }
  0xd0   : > { %1027 = vmatprep.subr.bf16.mxu0 %v1687_v3 }
  0xd3   : > { %1028 = vmatpush1.bf16.msra.mxu0 %v1685_v6 }
  0xd4   : > { %1029 = vmatprep.subr.bf16.mxu0 %v1693_v7 }
  0xd7   : > { %1030 = vmatpush1.bf16.msra.mxu0 %v1691_v10 }
  0xd8   : > { %1031 = vmatprep.subr.bf16.mxu0 %v1699_v11 }
  0xdb   : > { %1032 = vmatpush1.bf16.msra.mxu0 %v1697_v13 }
  0xdc   : > { %1033 = vmatprep.subr.bf16.mxu0 %v1705_v14 }
  0xdf   : > { %1034 = vmatpush1.bf16.msra.mxu0 %v1703_v15 }
  0xe0   : > { %1035 = vmatprep.subr.bf16.mxu0 %v1711_v16 }
  0xe3   : > { %1036 = vmatpush1.bf16.msra.mxu0 %v1709_v17 }
  0xe4   : > { %1037 = vmatprep.subr.bf16.mxu0 %v1717_v18 }
  0xe7   : > { %1038 = vmatpush1.bf16.msra.mxu0 %v1715_v19 }
  0xe8   : > { %1039 = vmatprep.subr.bf16.mxu0 %v1723_v20 }
  0xeb   : > { %1040 = vmatpush1.bf16.msra.mxu0 %v1721_v21 }
  0xec   : > { %1041 = vmatprep.subr.bf16.mxu0 %v1729_v22 }
  0xef   : > { %1042 = vmatpush1.bf16.msra.mxu0 %v1727_v23 }
  0xf0   : > { %1043 = vmatprep.subr.bf16.mxu0 %v1735_v24 }
  0xf3   : > { %1044 = vmatpush1.bf16.msra.mxu0 %v1733_v25 }
  0xf4   : > { %1045 = vmatprep.subr.bf16.mxu0 %v1741_v26 }
  0xf7   : > { %1046 = vmatpush1.bf16.msra.mxu0 %v1739_v27 }
  0xf8   : > { %1047 = vmatprep.subr.bf16.mxu0 %v1747_v28 }
  0xfb   : > { %1048 = vmatpush1.bf16.msra.mxu0 %v1745_v29 }
  0xfc   : > { %1049 = vmatprep.subr.bf16.mxu0 %v1753_v30 }
  0xff   : > { %1050 = vmatpush1.bf16.msra.mxu0 %v1751_v31 }
 0x100   : > { %1051 = vmatprep.subr.bf16.mxu0 %v1757_v32 }
 0x103   : > { %1052 = vmatpush1.bf16.msra.mxu0 %v1755_v33 }
 0x106   : > { %1054 = vmatmul.mubr.bf16.vlgmr.msra.gmra.mrb[4].mxu0 %v2274_v57 }
 0x199   : > { %v969_v45 = vpop.f32.mrb[0].mxu0 }
 0x19a   : > { %v970_v46 = vadd.f32 %v969_v45, %v418_v43  ;;  %v971_v47 = vpop.f32.mrb[1].mxu0 }
 0x19b   : > { %v972_v48 = vadd.f32 %v971_v47, %v422_v44  ;;  %v973_v49 = vpop.f32.mrb[2].mxu0 }
 0x19c   : > { %v974_v50 = vadd.f32 %v973_v49, %v418_v43  ;;  %v975_v51 = vpop.f32.mrb[3].mxu0 }
 0x19d   : > { %v1487_v52 = vpack.c.bf16 %v972_v48, %v970_v46  ;;  %v976_v53 = vadd.f32 %v975_v51, %v422_v44 }
 0x19f   : > { %1076 = vst [vmem:[%s296_s30] sm:$0xff] %v1487_v52  ;;  %v1488_v54 = vpack.c.bf16 %v976_v53, %v974_v50 }
 0x1a1   : > { %1077 = vst [vmem:[%s296_s30 + $0x8] sm:$0xff] %v1488_v54 }
 0x1a2   : > { %1857 = shalt.err (!%p1854_p12)
}
 0x1a3   : > { %s1858_s27 = scalar_lea.hbm %s2301_s13, 256  ;;  %s1862_s9 = scalar_lea.hbm %s2440_s3, 1024 }
 0x1a4   : > { %p1859_p11 = scmp.ne.s32.totalorder %s2301_s13, %s1858_s27  ;;  %p1863_p9 = scmp.lt.u32.totalorder %s2301_s13, %s2440_s3 }
 0x1a5   : > { %p1864_p0 = scmp.lt.u32.totalorder %s1862_s9, %s1858_s27  ;;  %p1866_p10 = scmp.lt.u32.totalorder %s1858_s27, %s2301_s13 }
 0x1a6   : > { %p1860_p1 = pnand %p1859_p11, %p2190_p6 }
 0x1a7   : > { %p1865_p2 = por %p1864_p0, %p1863_p9 }
 0x1a8   : > { %p1861_p5 = pneg %p1860_p1 }
 0x1a9   : > { %p1867_p4 = por %p1866_p10, %p1865_p2 }
 0x1ab   : > { %p1868_p8 = pnand %p1867_p4, %p1861_p5 }
 0x1ad   : > { %1871 = shalt.err (!%p1868_p8)
}
 0x1ae   : > { %s2016_s28 = smov 128   ;;  %s2017_s30 = smov 8   ;;  %v425_v55 = vsub.s32 2, %v2280_v35  ;;  %v429_v56 = vsub.s32 3, %v2280_v35  ;;  %v1012_v59 = vpop.f32.mrb[0].mxu1 }
 0x1af   : > { %1506 = dma.vmem_to_hbm [thread:$0]  (%p2190_p6), %s2295_s12, 256, %s2301_s13, %s1107_s16, %s2016_s28, %s2016_s28, %s2017_s30   ;;  %v1014_v61 = vpop.f32.mrb[1].mxu1 }
 0x1b0   : > { %v426_v57 = vrot.slane %v413_v37, %v425_v55  ;;  %v430_v58 = vrot.slane %v413_v37, %v429_v56  ;;  %s303_s21 = scalar_lea.vmem [#allocation9], %s2254_s5  ;;  %v1016_v63 = vpop.f32.mrb[2].mxu1  ;;  %s1111_s14 = sand.u32 1, %s2091_s26  }
 0x1b1   : > { %s1152_s22 = sshll.u32 %s303_s21, 4  ;;  %v1018_v1 = vpop.f32.mrb[3].mxu1  ;;  %s2473_s13 = sld [smem:[#allocation21_spill]]  ;;  %s2334_s22 = int_to_ptr.vmem [resolvable:$true] %s1152_s22 }
 0x1b2   : > { %v1013_v60 = vadd.f32 %v1012_v59, %v426_v57  ;;  %v1015_v62 = vadd.f32 %v1014_v61, %v430_v58  ;;  %v1017_v0 = vadd.f32 %v1016_v63, %v426_v57  ;;  %v1019_v3 = vadd.f32 %v1018_v1, %v430_v58  ;;  %s2342_s17 = scalar_lea.sflag [#allocation10], %s1111_s14  ;;  %s1872_s6 = scalar_lea.vmem %s2334_s22, 256 }
 0x1b3   : > { %p1873_p13 = scmp.ne.s32.totalorder %s2334_s22, %s1872_s6  ;;  %s2018_s26 = smov [#allocation9]  }
 0x1b4   : > { %v1489_v2 = vpack.c.bf16 %v1015_v62, %v1013_v60  ;;  %v1490_v4 = vpack.c.bf16 %v1019_v3, %v1017_v0  ;;  %s1876_s7 = sshll.u32 %s2018_s26, 4  ;;  %s1877_s7 = int_to_ptr.vmem [resolvable:$false] %s1876_s7 }
 0x1b5   : > { %p1874_p3 = pnand %p1873_p13, %p2190_p6  ;;  %s1878_s27 = scalar_lea.vmem %s1877_s7, 512 }
 0x1b6   : > { %1090 = vst [vmem:[%s303_s21] sm:$0xff] %v1489_v2  ;;  %1091 = vst [vmem:[%s303_s21 + $0x8] sm:$0xff] %v1490_v4  ;;  %p1879_p12 = scmp.lt.s32.totalorder %s2334_s22, %s1877_s7  ;;  %p1880_p11 = scmp.lt.s32.totalorder %s1878_s27, %s1872_s6 }
 0x1b7   : > { %s2340_s16 = scalar_lea.hbm %s2473_s13, %s2293_s8  ;;  %p1875_p7 = pneg %p1874_p3 }
 0x1b8   : > { %p1881_p1 = por %p1880_p11, %p1879_p12 }
 0x1ba   : > { %p1882_p5 = pnand %p1881_p1, %p1875_p7 }
 0x1bc   : > { %1885 = shalt.err (!%p1882_p5)
}
 0x1bd   : > { %s1886_s29 = scalar_lea.hbm %s2340_s16, 256  ;;  %s1890_s1 = scalar_lea.hbm %s2473_s13, 1024 }
 0x1be   : > { %p1887_p9 = scmp.ne.s32.totalorder %s2340_s16, %s1886_s29  ;;  %p1891_p10 = scmp.lt.u32.totalorder %s2340_s16, %s2473_s13 }
 0x1bf   : > { %p1892_p4 = scmp.lt.u32.totalorder %s1890_s1, %s1886_s29  ;;  %p1894_p13 = scmp.lt.u32.totalorder %s1886_s29, %s2340_s16 }
 0x1c0   : > { %p1888_p0 = pnand %p1887_p9, %p2190_p6 }
 0x1c1   : > { %p1893_p8 = por %p1892_p4, %p1891_p10 }
 0x1c2   : > { %p1889_p2 = pneg %p1888_p0 }
 0x1c3   : > { %p1895_p3 = por %p1894_p13, %p1893_p8 }
 0x1c5   : > { %p1896_p7 = pnand %p1895_p3, %p1889_p2 }
 0x1c7   : > { %1899 = shalt.err (!%p1896_p7)
}
 0x1c8   : > { %1507 = dma.vmem_to_hbm [thread:$0]  (%p2190_p6), %s2334_s22, 256, %s2340_s16, %s2342_s17, %s2016_s28, %s2016_s28, %s2017_s30  }
 0x1c9   : > { %s310_s14 = scalar_lea.vmem [#allocation11], %s2254_s5  ;;  %s2474_s16 = sld [smem:[#allocation22_spill]] }
 0x1ca   : > { %s1171_s15 = sshll.u32 %s310_s14, 4  ;;  %s2019_s26 = smov [#allocation11]   ;;  %s2374_s15 = int_to_ptr.vmem [resolvable:$true] %s1171_s15 }
 0x1cb   : > { %s1900_s5 = scalar_lea.vmem %s2374_s15, 256  ;;  %s1904_s7 = sshll.u32 %s2019_s26, 4  ;;  %s1905_s7 = int_to_ptr.vmem [resolvable:$false] %s1904_s7 }
 0x1cc   : > { %p1901_p12 = scmp.ne.s32.totalorder %s2374_s15, %s1900_s5  ;;  %s1906_s27 = scalar_lea.vmem %s1905_s7, 512 }
 0x1cd   : > { %p1907_p5 = scmp.lt.s32.totalorder %s2374_s15, %s1905_s7  ;;  %p1908_p9 = scmp.lt.s32.totalorder %s1906_s27, %s1900_s5 }
 0x1ce   : > { %p1902_p11 = pnand %p1901_p12, %p2190_p6 }
 0x1cf   : > { %s2380_s6 = scalar_lea.hbm %s2474_s16, %s2293_s8  ;;  %p1909_p0 = por %p1908_p9, %p1907_p5 }
 0x1d0   : > { %p1903_p1 = pneg %p1902_p11 }
 0x1d2   : > { %p1910_p2 = pnand %p1909_p0, %p1903_p1 }
 0x1d9   : > { %v1055_v5 = vpop.f32.mrb[4].mxu0 }
 0x1da   : > { %v1056_v6 = vadd.f32 %v1055_v5, %v2283_v38  ;;  %v1057_v7 = vpop.f32.mrb[5].mxu0 }
 0x1db   : > { %v1058_v8 = vadd.f32 %v1057_v7, %v2286_v40  ;;  %v1059_v9 = vpop.f32.mrb[6].mxu0 }
 0x1dc   : > { %v1060_v10 = vadd.f32 %v1059_v9, %v2283_v38  ;;  %v1061_v11 = vpop.f32.mrb[7].mxu0 }
 0x1dd   : > { %v1491_v12 = vpack.c.bf16 %v1058_v8, %v1056_v6  ;;  %v1062_v13 = vadd.f32 %v1061_v11, %v2286_v40 }
 0x1df   : > { %1104 = vst [vmem:[%s310_s14] sm:$0xff] %v1491_v12  ;;  %v1492_v14 = vpack.c.bf16 %v1062_v13, %v1060_v10 }
 0x1e1   : > { %1105 = vst [vmem:[%s310_s14 + $0x8] sm:$0xff] %v1492_v14 }
 0x1e2   : > { %1913 = shalt.err (!%p1910_p2)
}
 0x1e3   : > { %s1914_s8 = scalar_lea.hbm %s2380_s6, 256  ;;  %s1918_s9 = scalar_lea.hbm %s2474_s16, 1024 }
 0x1e4   : > { %p1915_p10 = scmp.ne.s32.totalorder %s2380_s6, %s1914_s8  ;;  %p1919_p13 = scmp.lt.u32.totalorder %s2380_s6, %s2474_s16 }
 0x1e5   : > { %p1920_p3 = scmp.lt.u32.totalorder %s1918_s9, %s1914_s8  ;;  %p1922_p12 = scmp.lt.u32.totalorder %s1914_s8, %s2380_s6 }
 0x1e6   : > { %p1916_p4 = pnand %p1915_p10, %p2190_p6 }
 0x1e7   : > { %p1921_p7 = por %p1920_p3, %p1919_p13 }
 0x1e8   : > { %p1917_p8 = pneg %p1916_p4 }
 0x1e9   : > { %p1923_p11 = por %p1922_p12, %p1921_p7 }
 0x1eb   : > { %p1924_p1 = pnand %p1923_p11, %p1917_p8 }
 0x1ed   : > { %1927 = shalt.err (!%p1924_p1)
}
 0x1ee   : > { %1508 = dma.vmem_to_hbm [thread:$0]  (%p2190_p6), %s2374_s15, 256, %s2380_s6, %s2342_s17, %s2016_s28, %s2016_s28, %s2017_s30  }
 0x1ef PF: > { %s2475_s21 = sld [smem:[#allocation16_spill]]  ;;  %s2476_s14 = sld [smem:[#allocation17_spill]] }
 0x1f0   : > { %p1538_p5 = scmp.ge.s32.totalorder %s2006_s25, 2 }
 0x1f5   : > { %s1186_s22 = sand.u32 1, %s2475_s21   ;;  %p2477_p9 = scmp.ne.s32.totalorder %s2476_s14, 0 }
 0x1f6   : > { %s1187_s12 = scalar_lea.sflag [#allocation4], %s1186_s22 }
 0x1f7   : > { %p1524_p0 = pnand %p1538_p5, %p2477_p9 }
 0x1f9   : > { %1969 = dma.done.wait (!%p1524_p0), %s1187_s12, 256  }
 0x1fa   : > { %1971 = vsyncadd (!%p1524_p0), %s1187_s12, 4294967040  ;;  %s2478_s10 = sadd.s32 4294967294, %s2006_s25  }
 0x1fb   : > { %s1195_s5 = sand.u32 1, %s2478_s10  }
 0x1fc   : > { %s1196_s26 = scalar_lea.sflag [#allocation10], %s1195_s5 }
 0x1fd   : > { %1973 = dma.done.wait (!%p1524_p0), %s1196_s26, 512  }
 0x1fe   : > { %1975 = vsyncadd (!%p1524_p0), %s1196_s26, 4294966784  ;;  %s26_s25 = sadd.s32 1, %s2006_s25   ;;  %s2479_s28 = sld [smem:[#allocation18_spill]] }
 0x1ff   : > { %p23_p6 = scmp.ge.s32.totalorder %s26_s25, 6   ;;  %s2480_s18 = smov %s1982_s19 }
 0x200   : > { %s2481_s19 = smov %s1986_s20  ;;  %s2482_s20 = smov %s2203_s2 }
 0x201   : > { %s2483_s21 = smov %s1998_s23  ;;  %s2484_s22 = smov %s2002_s24 }
 0x202   : > { %s2486_s24 = smov %s2492_s11  ;;  %25 = sbr.rel (!%p23_p6) target bundleno = 15 (0xf), region = 117 }
 0x204   : > { %s2485_s23 = smov %s2479_s28 }
 0x209   :  { %1210 = vsyncpa [#allocation3], 1 }
 0x20a   :  { %1212 = vsyncpa [#allocation3 + $0x1], 1 }
 0x20b   :  { %1213 = vsyncpa [#allocation6], 1 }
 0x20c   :  { %1214 = vsyncpa [#allocation4], 1 }
 0x20d   :  { %1216 = vsyncpa [#allocation4 + $0x1], 1 }
 0x20e   :  { %1217 = vsyncpa [#allocation10], 1 }
 0x20f   :  { %1219 = vsyncpa [#allocation10 + $0x1], 1 }

</bundles_post_ra>
